<compile_context>
chip_gen: v5e
topology: v5e:2x2
jax: 0.10.0
libtpu: 0.0.40
codegen_flags: <defaults>
</compile_context>

<pallas_src>
import functools

import jax
import jax.numpy as jnp
from jax.experimental import pallas as pl
from jax.experimental.pallas import tpu as pltpu

IN_FEATURES = 2048
OUT_FEATURES = 256


def _relu_linear_kernel(x_ref, w_ref, b_ref, o_ref):
    """out = relu(x) @ w + b for one batch tile; f32 accumulation on the MXU."""
    x_act = jnp.maximum(x_ref[...], 0)
    acc = jnp.dot(x_act, w_ref[...], preferred_element_type=jnp.float32)
    o_ref[...] = (acc + b_ref[...].astype(jnp.float32)).astype(o_ref.dtype)


@functools.partial(jax.jit, static_argnames=("tm", "compute_dtype"))
def post_resnet_forward(x, w, b, *, tm=256, compute_dtype=jnp.bfloat16):
    """out = relu(x) @ w + b with x:(M,K), w:(K,N) (= W_pt.T), b:(N,)."""
    M, K = x.shape
    Kw, N = w.shape
    assert K == Kw, (K, Kw)
    out_dtype = x.dtype

    xc = x.astype(compute_dtype)
    wc = w.astype(compute_dtype)
    bc = jnp.asarray(b, jnp.float32).reshape(1, N)

    if M <= tm:
        # Single-shot, gridless: everything (~2 MiB) fits in VMEM as full blocks.
        return pl.pallas_call(
            _relu_linear_kernel,
            out_shape=jax.ShapeDtypeStruct((M, N), out_dtype),
        )(xc, wc, bc)

    # Tiled over the batch only; weight and bias stay VMEM-resident across tiles.
    m_pad = pl.cdiv(M, tm) * tm
    if m_pad != M:
        xc = jnp.pad(xc, ((0, m_pad - M), (0, 0)))

    out = pl.pallas_call(
        _relu_linear_kernel,
        out_shape=jax.ShapeDtypeStruct((m_pad, N), out_dtype),
        grid_spec=pltpu.PrefetchScalarGridSpec(
            num_scalar_prefetch=0,
            grid=(m_pad // tm,),
            in_specs=[
                pl.BlockSpec((tm, K), lambda i: (i, 0)),  # x: streamed per tile
                pl.BlockSpec((K, N), lambda i: (0, 0)),   # w: resident in VMEM
                pl.BlockSpec((1, N), lambda i: (0, 0)),   # b: resident in VMEM
            ],
            out_specs=pl.BlockSpec((tm, N), lambda i: (i, 0)),  # lane-dense N=256
        ),
        compiler_params=pltpu.CompilerParams(
            dimension_semantics=("parallel",),  # v7x: both TCs split the batch
        ),
    )(xc, wc, bc)
    return out[:M]


def init_params(key):
    """Deterministic synthetic init matching nn.Linear(2048, 256) shapes."""
    kw, kb = jax.random.split(key)
    bound = 1.0 / jnp.sqrt(IN_FEATURES)
    # PyTorch stores weight as (out, in); we store its transpose (in, out).
    w = jax.random.uniform(kw, (IN_FEATURES, OUT_FEATURES), jnp.float32, -bound, bound)
    b = jax.random.uniform(kb, (OUT_FEATURES,), jnp.float32, -bound, bound)
    return w, b


if __name__ == "__main__":
    key = jax.random.PRNGKey(0)
    kx, kp, kx2 = jax.random.split(key, 3)
    w, b = init_params(kp)

    # --- small-batch inference path (gridless single-shot kernel) ---
    batch = 8
    x = jax.random.normal(kx, (batch, IN_FEATURES), jnp.float32)

    out_bf16 = jax.block_until_ready(post_resnet_forward(x, w, b))
    out_f32 = jax.block_until_ready(
        post_resnet_forward(x, w, b, compute_dtype=jnp.float32)
    )

    ref_f32 = jnp.maximum(x, 0.0) @ w + b[None, :]
    ref_bf16 = (
        jnp.dot(
            jnp.maximum(x, 0.0).astype(jnp.bfloat16),
            w.astype(jnp.bfloat16),
            preferred_element_type=jnp.float32,
        )
        + b[None, :]
    )

    assert out_bf16.shape == (batch, OUT_FEATURES)
    assert jnp.allclose(out_f32, ref_f32, atol=1e-4, rtol=1e-4)
    assert jnp.allclose(out_bf16, ref_bf16, atol=1e-2, rtol=1e-2)

    # --- tiled path: batch not a multiple of tm -> exercises padding + resident w ---
    batch2 = 384
    x2 = jax.random.normal(kx2, (batch2, IN_FEATURES), jnp.float32)
    out2 = jax.block_until_ready(post_resnet_forward(x2, w, b, tm=256))
    ref2 = (
        jnp.dot(
            jnp.maximum(x2, 0.0).astype(jnp.bfloat16),
            w.astype(jnp.bfloat16),
            preferred_element_type=jnp.float32,
        )
        + b[None, :]
    )
    assert out2.shape == (batch2, OUT_FEATURES)
    assert jnp.allclose(out2, ref2, atol=1e-2, rtol=1e-2)

    print("KERNEL_OK")
</pallas_src>

<mosaic_0001>
module attributes {stable_mosaic.version = 11 : i64} {
  func.func @_relu_linear_kernel(%arg0: memref<8x2048xbf16, #tpu.memory_space<vmem>>, %arg1: memref<2048x256xbf16, #tpu.memory_space<vmem>>, %arg2: memref<1x256xf32, #tpu.memory_space<vmem>>, %arg3: memref<8x256xf32, #tpu.memory_space<vmem>>) attributes {dimension_semantics = [], scalar_prefetch = 0 : i64, scratch_operands = 0 : i64, tpu.core_type = #tpu.core_type<tc>} {
    %c0 = arith.constant 0 : index
    %c0_0 = arith.constant 0 : index
    %0 = vector.load %arg0[%c0, %c0_0] : memref<8x2048xbf16, #tpu.memory_space<vmem>>, vector<8x2048xbf16>
    %cst = arith.constant 0.000000e+00 : bf16
    %1 = vector.broadcast %cst : bf16 to vector<8x2048xbf16>
    %2 = arith.maximumf %0, %1 : vector<8x2048xbf16>
    %c0_1 = arith.constant 0 : index
    %c0_2 = arith.constant 0 : index
    %3 = vector.load %arg1[%c0_1, %c0_2] : memref<2048x256xbf16, #tpu.memory_space<vmem>>, vector<2048x256xbf16>
    %cst_3 = arith.constant dense<0.000000e+00> : vector<8x256xf32>
    %4 = tpu.matmul %2, %3, %cst_3 {dimension_numbers = #tpu.dot_dimension_numbers<[1], [0], [0], [1], [0, 0, 1, 1], [], []>} : vector<8x2048xbf16>, vector<2048x256xbf16>, vector<8x256xf32> -> vector<8x256xf32>
    %c0_4 = arith.constant 0 : index
    %c0_5 = arith.constant 0 : index
    %5 = vector.load %arg2[%c0_4, %c0_5] : memref<1x256xf32, #tpu.memory_space<vmem>>, vector<1x256xf32>
    %6 = vector.broadcast %5 : vector<1x256xf32> to vector<8x256xf32>
    %7 = arith.addf %4, %6 : vector<8x256xf32>
    %c0_6 = arith.constant 0 : index
    %c0_7 = arith.constant 0 : index
    %8 = vector.load %arg3[%c0_6, %c0_7] : memref<8x256xf32, #tpu.memory_space<vmem>>, vector<8x256xf32>
    tpu.vector_store %arg3[%c0_6, %c0_7], %7 {strides = array<i32>} : memref<8x256xf32, #tpu.memory_space<vmem>>, vector<8x256xf32>,
    return
  }
}

</mosaic_0001>

<bundles_post_ra>
// kernel: post_resnet_forward.1
= control target key start
LH: loop header
LB: loop body
LE: loop exit
PB: predicated region body
PF: predicated region fallthrough
CT: control target
= control target key end

     0   :  { %s5042_s0 = inlined_call_operand.vmem [shape: bf16[8,2048], index: 0, kind: input, shape index: {}]   ;;  %s5043_s1 = inlined_call_operand.vmem [shape: bf16[2048,256], index: 1, kind: input, shape index: {}]   ;;  %s5044_s2 = inlined_call_operand.vmem [shape: f32[1,256], index: 2, kind: input, shape index: {}]   ;;  %s5045_s3 = inlined_call_operand.hbm [shape: f32[8,256], index: 3, kind: output, shape index: {}]  }
   0x1   :  { %v2105_v0 = vld [vmem:[%s5043_s1 + $0x70] sm:$0xf]  ;;  %v3086_v1 = vld [vmem:[%s5043_s1 + $0x74] sm:$0xf0]  ;;  %v2097_v11 = vld [vmem:[%s5043_s1 + $0x60] sm:$0xf] }
   0x2   :  { %v2169_v2 = vld [vmem:[%s5043_s1 + $0xf0] sm:$0xf]  ;;  %v2106_v3 = vor.u32 %v3086_v1, %v2105_v0  ;;  %v3102_v4 = vld [vmem:[%s5043_s1 + $0xf4] sm:$0xf0]  ;;  %v3084_v13 = vld [vmem:[%s5043_s1 + $0x64] sm:$0xf0] }
   0x3   :  { %v2233_v5 = vld [vmem:[%s5043_s1 + $0x170] sm:$0xf]  ;;  %v3118_v6 = vld [vmem:[%s5043_s1 + $0x174] sm:$0xf0]  ;;  %v2170_v7 = vor.u32 %v3102_v4, %v2169_v2  ;;  %v2161_v14 = vld [vmem:[%s5043_s1 + $0xe0] sm:$0xf]  ;;  %v2098_v16 = vor.u32 %v3084_v13, %v2097_v11 }
   0x4   :  { %v2234_v8 = vor.u32 %v3118_v6, %v2233_v5  ;;  %v2297_v9 = vld [vmem:[%s5043_s1 + $0x1f0] sm:$0xf]  ;;  %v3134_v10 = vld [vmem:[%s5043_s1 + $0x1f4] sm:$0xf0]  ;;  %1613 = vmatpush.bf16.msra.mxu0 %v2106_v3  ;;  %v3100_v15 = vld [vmem:[%s5043_s1 + $0xe4] sm:$0xf0] }
   0x5   :  { %v2298_v12 = vor.u32 %v3134_v10, %v2297_v9  ;;  %1626 = vmatpush.bf16.msra.mxu1 %v2170_v7  ;;  %v2162_v17 = vor.u32 %v3100_v15, %v2161_v14  ;;  %v2225_v18 = vld [vmem:[%s5043_s1 + $0x160] sm:$0xf]  ;;  %v3116_v19 = vld [vmem:[%s5043_s1 + $0x164] sm:$0xf0]  ;;  %v2089_v23 = vld [vmem:[%s5043_s1 + $0x50] sm:$0xf] }
   0x6   :  { %1639 = vmatpush.bf16.msra.mxu2 %v2234_v8  ;;  %v2289_v20 = vld [vmem:[%s5043_s1 + $0x1e0] sm:$0xf]  ;;  %v2226_v21 = vor.u32 %v3116_v19, %v2225_v18  ;;  %v3132_v22 = vld [vmem:[%s5043_s1 + $0x1e4] sm:$0xf0]  ;;  %v3082_v24 = vld [vmem:[%s5043_s1 + $0x54] sm:$0xf0] }
   0x7   :  { %1652 = vmatpush.bf16.msra.mxu3 %v2298_v12  ;;  %v2290_v25 = vor.u32 %v3132_v22, %v2289_v20  ;;  %v2153_v26 = vld [vmem:[%s5043_s1 + $0xd0] sm:$0xf]  ;;  %v3098_v27 = vld [vmem:[%s5043_s1 + $0xd4] sm:$0xf0]  ;;  %v2090_v29 = vor.u32 %v3082_v24, %v2089_v23  ;;  %v2081_v35 = vld [vmem:[%s5043_s1 + $0x40] sm:$0xf] }
   0x8   :  { %v2217_v28 = vld [vmem:[%s5043_s1 + $0x150] sm:$0xf]  ;;  %1614 = vmatpush.bf16.msra.mxu0 %v2098_v16  ;;  %v3114_v30 = vld [vmem:[%s5043_s1 + $0x154] sm:$0xf0]  ;;  %v2154_v33 = vor.u32 %v3098_v27, %v2153_v26  ;;  %v3080_v36 = vld [vmem:[%s5043_s1 + $0x44] sm:$0xf0] }
   0x9   :  { %v2281_v31 = vld [vmem:[%s5043_s1 + $0x1d0] sm:$0xf]  ;;  %v3130_v32 = vld [vmem:[%s5043_s1 + $0x1d4] sm:$0xf0]  ;;  %1627 = vmatpush.bf16.msra.mxu1 %v2162_v17  ;;  %v2218_v34 = vor.u32 %v3114_v30, %v2217_v28  ;;  %v2145_v37 = vld [vmem:[%s5043_s1 + $0xc0] sm:$0xf]  ;;  %v2082_v44 = vor.u32 %v3080_v36, %v2081_v35 }
   0xa   :  { %1640 = vmatpush.bf16.msra.mxu2 %v2226_v21  ;;  %v2282_v38 = vor.u32 %v3130_v32, %v2281_v31  ;;  %v3096_v39 = vld [vmem:[%s5043_s1 + $0xc4] sm:$0xf0]  ;;  %v2209_v40 = vld [vmem:[%s5043_s1 + $0x140] sm:$0xf]  ;;  %v2073_v47 = vld [vmem:[%s5043_s1 + $0x30] sm:$0xf] }
   0xb   :  { %1653 = vmatpush.bf16.msra.mxu3 %v2290_v25  ;;  %v3112_v41 = vld [vmem:[%s5043_s1 + $0x144] sm:$0xf0]  ;;  %v2273_v42 = vld [vmem:[%s5043_s1 + $0x1c0] sm:$0xf]  ;;  %v2146_v45 = vor.u32 %v3096_v39, %v2145_v37  ;;  %v3078_v48 = vld [vmem:[%s5043_s1 + $0x34] sm:$0xf0] }
   0xc   :  { %v3128_v43 = vld [vmem:[%s5043_s1 + $0x1c4] sm:$0xf0]  ;;  %1615 = vmatpush.bf16.msra.mxu0 %v2090_v29  ;;  %v2210_v46 = vor.u32 %v3112_v41, %v2209_v40  ;;  %v2137_v49 = vld [vmem:[%s5043_s1 + $0xb0] sm:$0xf]  ;;  %v3094_v51 = vld [vmem:[%s5043_s1 + $0xb4] sm:$0xf0]  ;;  %v2074_v56 = vor.u32 %v3078_v48, %v2073_v47 }
   0xd   :  { %1628 = vmatpush.bf16.msra.mxu1 %v2154_v33  ;;  %v2274_v50 = vor.u32 %v3128_v43, %v2273_v42  ;;  %v2201_v52 = vld [vmem:[%s5043_s1 + $0x130] sm:$0xf]  ;;  %v3110_v53 = vld [vmem:[%s5043_s1 + $0x134] sm:$0xf0]  ;;  %v2138_v57 = vor.u32 %v3094_v51, %v2137_v49  ;;  %v2065_v59 = vld [vmem:[%s5043_s1 + $0x20] sm:$0xf] }
   0xe   :  { %1641 = vmatpush.bf16.msra.mxu2 %v2218_v34  ;;  %v2265_v54 = vld [vmem:[%s5043_s1 + $0x1b0] sm:$0xf]  ;;  %v3126_v55 = vld [vmem:[%s5043_s1 + $0x1b4] sm:$0xf0]  ;;  %v2202_v58 = vor.u32 %v3110_v53, %v2201_v52  ;;  %v3076_v60 = vld [vmem:[%s5043_s1 + $0x24] sm:$0xf0] }
   0xf   :  { %1654 = vmatpush.bf16.msra.mxu3 %v2282_v38  ;;  %v2129_v61 = vld [vmem:[%s5043_s1 + $0xa0] sm:$0xf]  ;;  %v2266_v62 = vor.u32 %v3126_v55, %v2265_v54  ;;  %v3092_v63 = vld [vmem:[%s5043_s1 + $0xa4] sm:$0xf0]  ;;  %v2066_v4 = vor.u32 %v3076_v60, %v2065_v59  ;;  %v2057_v7 = vld [vmem:[%s5043_s1 + $0x10] sm:$0xf] }
  0x10   :  { %1616 = vmatpush.bf16.msra.mxu0 %v2082_v44  ;;  %v2193_v0 = vld [vmem:[%s5043_s1 + $0x120] sm:$0xf]  ;;  %v3108_v1 = vld [vmem:[%s5043_s1 + $0x124] sm:$0xf0]  ;;  %v2130_v5 = vor.u32 %v3092_v63, %v2129_v61  ;;  %v3074_v8 = vld [vmem:[%s5043_s1 + $0x14] sm:$0xf0] }
  0x11   :  { %1629 = vmatpush.bf16.msra.mxu1 %v2146_v45  ;;  %v2257_v2 = vld [vmem:[%s5043_s1 + $0x1a0] sm:$0xf]  ;;  %v3124_v3 = vld [vmem:[%s5043_s1 + $0x1a4] sm:$0xf0]  ;;  %v2194_v6 = vor.u32 %v3108_v1, %v2193_v0  ;;  %v2121_v9 = vld [vmem:[%s5043_s1 + $0x90] sm:$0xf]  ;;  %v2058_v16 = vor.u32 %v3074_v8, %v2057_v7 }
  0x12   :  { %1642 = vmatpush.bf16.msra.mxu2 %v2210_v46  ;;  %v2258_v10 = vor.u32 %v3124_v3, %v2257_v2  ;;  %v3090_v11 = vld [vmem:[%s5043_s1 + $0x94] sm:$0xf0]  ;;  %v2185_v12 = vld [vmem:[%s5043_s1 + $0x110] sm:$0xf]  ;;  %v2049_v17 = vld [vmem:[%s5043_s1] sm:$0xf] }
  0x13   :  { %1655 = vmatpush.bf16.msra.mxu3 %v2274_v50  ;;  %v3106_v13 = vld [vmem:[%s5043_s1 + $0x114] sm:$0xf0]  ;;  %v2249_v14 = vld [vmem:[%s5043_s1 + $0x190] sm:$0xf]  ;;  %v3072_v18 = vld [vmem:[%s5043_s1 + $0x4] sm:$0xf0]  ;;  %v2122_v19 = vor.u32 %v3090_v11, %v2121_v9 }
  0x14   :  { %1617 = vmatpush.bf16.msra.mxu0 %v2074_v56  ;;  %v3122_v15 = vld [vmem:[%s5043_s1 + $0x194] sm:$0xf0]  ;;  %v2186_v20 = vor.u32 %v3106_v13, %v2185_v12  ;;  %v2113_v21 = vld [vmem:[%s5043_s1 + $0x80] sm:$0xf]  ;;  %v3088_v22 = vld [vmem:[%s5043_s1 + $0x84] sm:$0xf0]  ;;  %v2050_v31 = vor.u32 %v3072_v18, %v2049_v17 }
  0x15   :  { %1630 = vmatpush.bf16.msra.mxu1 %v2138_v57  ;;  %v2177_v23 = vld [vmem:[%s5043_s1 + $0x100] sm:$0xf]  ;;  %v2250_v24 = vor.u32 %v3122_v15, %v2249_v14  ;;  %v3104_v25 = vld [vmem:[%s5043_s1 + $0x104] sm:$0xf0]  ;;  %v2361_v28 = vld [vmem:[%s5043_s1 + $0x270] sm:$0xf]  ;;  %v2114_v35 = vor.u32 %v3088_v22, %v2113_v21 }
  0x16   :  { %1643 = vmatpush.bf16.msra.mxu2 %v2202_v58  ;;  %v2241_v26 = vld [vmem:[%s5043_s1 + $0x180] sm:$0xf]  ;;  %v3120_v27 = vld [vmem:[%s5043_s1 + $0x184] sm:$0xf0]  ;;  %v3150_v29 = vld [vmem:[%s5043_s1 + $0x274] sm:$0xf0]  ;;  %v2178_v36 = vor.u32 %v3104_v25, %v2177_v23 }
  0x17   :  { %1656 = vmatpush.bf16.msra.mxu3 %v2266_v62  ;;  %v2425_v30 = vld [vmem:[%s5043_s1 + $0x2f0] sm:$0xf]  ;;  %v3166_v32 = vld [vmem:[%s5043_s1 + $0x2f4] sm:$0xf0]  ;;  %v2242_v39 = vor.u32 %v3120_v27, %v2241_v26  ;;  %v2362_v40 = vor.u32 %v3150_v29, %v2361_v28  ;;  %v2353_v43 = vld [vmem:[%s5043_s1 + $0x260] sm:$0xf] }
  0x18   :  { %1618 = vmatpush.bf16.msra.mxu0 %v2066_v4  ;;  %v2489_v33 = vld [vmem:[%s5043_s1 + $0x370] sm:$0xf]  ;;  %v3182_v34 = vld [vmem:[%s5043_s1 + $0x374] sm:$0xf0]  ;;  %v2426_v41 = vor.u32 %v3166_v32, %v2425_v30  ;;  %v3148_v44 = vld [vmem:[%s5043_s1 + $0x264] sm:$0xf0] }
  0x19   :  { %1631 = vmatpush.bf16.msra.mxu1 %v2130_v5  ;;  %v2553_v37 = vld [vmem:[%s5043_s1 + $0x3f0] sm:$0xf]  ;;  %v3198_v38 = vld [vmem:[%s5043_s1 + $0x3f4] sm:$0xf0]  ;;  %v2490_v42 = vor.u32 %v3182_v34, %v2489_v33  ;;  %v2417_v45 = vld [vmem:[%s5043_s1 + $0x2e0] sm:$0xf]  ;;  %v2354_v52 = vor.u32 %v3148_v44, %v2353_v43 }
  0x1a   :  { %1644 = vmatpush.bf16.msra.mxu2 %v2194_v6  ;;  %v2554_v46 = vor.u32 %v3198_v38, %v2553_v37  ;;  %v3164_v47 = vld [vmem:[%s5043_s1 + $0x2e4] sm:$0xf0]  ;;  %v2481_v48 = vld [vmem:[%s5043_s1 + $0x360] sm:$0xf]  ;;  %v2345_v53 = vld [vmem:[%s5043_s1 + $0x250] sm:$0xf] }
  0x1b   :  { %1657 = vmatpush.bf16.msra.mxu3 %v2258_v10  ;;  %v3180_v49 = vld [vmem:[%s5043_s1 + $0x364] sm:$0xf0]  ;;  %v2545_v50 = vld [vmem:[%s5043_s1 + $0x3e0] sm:$0xf]  ;;  %v3146_v54 = vld [vmem:[%s5043_s1 + $0x254] sm:$0xf0]  ;;  %v2418_v55 = vor.u32 %v3164_v47, %v2417_v45 }
  0x1c   :  { %1619 = vmatpush.bf16.msra.mxu0 %v2058_v16  ;;  %v3196_v51 = vld [vmem:[%s5043_s1 + $0x3e4] sm:$0xf0]  ;;  %v2482_v56 = vor.u32 %v3180_v49, %v2481_v48  ;;  %v2409_v57 = vld [vmem:[%s5043_s1 + $0x2d0] sm:$0xf]  ;;  %v3162_v58 = vld [vmem:[%s5043_s1 + $0x2d4] sm:$0xf0]  ;;  %v2346_v3 = vor.u32 %v3146_v54, %v2345_v53 }
  0x1d   :  { %1632 = vmatpush.bf16.msra.mxu1 %v2122_v19  ;;  %v16_v59 = vld [vmem:[%s5042_s0 + $0x8] sm:$0xff]  ;;  %v2546_v60 = vor.u32 %v3196_v51, %v2545_v50  ;;  %v2473_v61 = vld [vmem:[%s5043_s1 + $0x350] sm:$0xf]  ;;  %v3178_v62 = vld [vmem:[%s5043_s1 + $0x354] sm:$0xf0]  ;;  %v2410_v4 = vor.u32 %v3162_v58, %v2409_v57 }
  0x1e   :  { %1645 = vmatpush.bf16.msra.mxu2 %v2186_v20  ;;  %v25_v63 = vunpack.c.l.bf16 %v16_v59  ;;  %v26_v0 = vunpack.c.h.bf16 %v16_v59  ;;  %v2537_v1 = vld [vmem:[%s5043_s1 + $0x3d0] sm:$0xf]  ;;  %v3194_v2 = vld [vmem:[%s5043_s1 + $0x3d4] sm:$0xf0]  ;;  %v2337_v5 = vld [vmem:[%s5043_s1 + $0x240] sm:$0xf]  ;;  %v2474_v9 = vor.u32 %v3178_v62, %v2473_v61 }
  0x1f   :  { %1658 = vmatpush.bf16.msra.mxu3 %v2250_v24  ;;  %v3144_v6 = vld [vmem:[%s5043_s1 + $0x244] sm:$0xf0]  ;;  %v15_v8 = vld [vmem:[%s5042_s0] sm:$0xff]  ;;  %v2538_v15 = vor.u32 %v3194_v2, %v2537_v1  ;;  %v2329_v27 = vld [vmem:[%s5043_s1 + $0x230] sm:$0xf] }
  0x20   :  { %1620 = vmatpush.bf16.msra.mxu0 %v2050_v31  ;;  %v41_v7 = vmax.f32 %v25_v63, 0.0  ;;  %v2401_v10 = vld [vmem:[%s5043_s1 + $0x2c0] sm:$0xf]  ;;  %v3160_v11 = vld [vmem:[%s5043_s1 + $0x2c4] sm:$0xf0]  ;;  %v23_v12 = vunpack.c.l.bf16 %v15_v8  ;;  %v42_v13 = vmax.f32 %v26_v0, 0.0  ;;  %v24_v14 = vunpack.c.h.bf16 %v15_v8 }
  0x21   :  { %1633 = vmatpush.bf16.msra.mxu1 %v2114_v35  ;;  %v2465_v16 = vld [vmem:[%s5043_s1 + $0x340] sm:$0xf]  ;;  %v3176_v17 = vld [vmem:[%s5043_s1 + $0x344] sm:$0xf0]  ;;  %v2338_v24 = vor.u32 %v3144_v6, %v2337_v5  ;;  %v2402_v25 = vor.u32 %v3160_v11, %v2401_v10  ;;  %v3142_v28 = vld [vmem:[%s5043_s1 + $0x234] sm:$0xf0] }
  0x22   :  { %1646 = vmatpush.bf16.msra.mxu2 %v2178_v36  ;;  %v3663_v18 = vpack.c.bf16 %v41_v7, %v41_v7  ;;  %v2529_v19 = vld [vmem:[%s5043_s1 + $0x3c0] sm:$0xf]  ;;  %v3192_v20 = vld [vmem:[%s5043_s1 + $0x3c4] sm:$0xf0]  ;;  %v39_v21 = vmax.f32 %v23_v12, 0.0  ;;  %v3671_v22 = vpack.c.bf16 %v42_v13, %v42_v13  ;;  %v40_v23 = vmax.f32 %v24_v14, 0.0 }
  0x23   :  { %1659 = vmatpush.bf16.msra.mxu3 %v2242_v39  ;;  %v2466_v26 = vor.u32 %v3176_v17, %v2465_v16  ;;  %v2393_v29 = vld [vmem:[%s5043_s1 + $0x2b0] sm:$0xf]  ;;  %v2530_v32 = vor.u32 %v3192_v20, %v2529_v19  ;;  %v3158_v33 = vld [vmem:[%s5043_s1 + $0x2b4] sm:$0xf0]  ;;  %v2330_v38 = vor.u32 %v3142_v28, %v2329_v27  ;;  %v2385_v43 = vld [vmem:[%s5043_s1 + $0x2a0] sm:$0xf] }
  0x24   :  { %1665 = vmatpush.bf16.msrb.mxu0 %v2362_v40  ;;  %v3683_v30 = vpack.c.bf16 %v39_v21, %v39_v21  ;;  %v3685_v31 = vpack.c.bf16 %v40_v23, %v40_v23  ;;  %v2457_v34 = vld [vmem:[%s5043_s1 + $0x330] sm:$0xf]  ;;  %v3174_v35 = vld [vmem:[%s5043_s1 + $0x334] sm:$0xf0]  ;;  %v2394_v39 = vor.u32 %v3158_v33, %v2393_v29  ;;  %v3156_v45 = vld [vmem:[%s5043_s1 + $0x2a4] sm:$0xf0] }
  0x25   :  { %1678 = vmatpush.bf16.msrb.mxu1 %v2426_v41  ;;  %1647 = vmatmul.bf16.vlgmr.msra.gmra.mxu2 %v3663_v18  ;;  %v2521_v36 = vld [vmem:[%s5043_s1 + $0x3b0] sm:$0xf]  ;;  %v3190_v37 = vld [vmem:[%s5043_s1 + $0x3b4] sm:$0xf0]  ;;  %v2458_v40 = vor.u32 %v3174_v35, %v2457_v34  ;;  %v2321_v41 = vld [vmem:[%s5043_s1 + $0x220] sm:$0xf]  ;;  %v2386_v53 = vor.u32 %v3156_v45, %v2385_v43 }
  0x26   :  { %1691 = vmatpush.bf16.msrb.mxu2 %v2490_v42  ;;  %1621 = vmatmul.bf16.vlgmr.msra.gmra.mxu0 %v3683_v30  ;;  %v3140_v42 = vld [vmem:[%s5043_s1 + $0x224] sm:$0xf0]  ;;  %v2522_v44 = vor.u32 %v3190_v37, %v2521_v36  ;;  %v2513_v48 = vld [vmem:[%s5043_s1 + $0x3a0] sm:$0xf]  ;;  %v2313_v51 = vld [vmem:[%s5043_s1 + $0x210] sm:$0xf] }
  0x27   :  { %1704 = vmatpush.bf16.msrb.mxu3 %v2554_v46  ;;  %1634 = vmatmul.bf16.vlgmr.msra.gmra.mxu1 %v3685_v31  ;;  %v2449_v46 = vld [vmem:[%s5043_s1 + $0x320] sm:$0xf]  ;;  %v3172_v47 = vld [vmem:[%s5043_s1 + $0x324] sm:$0xf0]  ;;  %v2322_v50 = vor.u32 %v3140_v42, %v2321_v41  ;;  %v18_v57 = vld [vmem:[%s5042_s0 + $0x18] sm:$0xff] }
  0x28   :  { %1666 = vmatpush.bf16.msrb.mxu0 %v2354_v52  ;;  %1660 = vmatmul.bf16.vlgmr.msra.gmra.mxu3 %v3671_v22  ;;  %v3188_v49 = vld [vmem:[%s5043_s1 + $0x3a4] sm:$0xf0]  ;;  %v3138_v52 = vld [vmem:[%s5043_s1 + $0x214] sm:$0xf0]  ;;  %v2450_v54 = vor.u32 %v3172_v47, %v2449_v46  ;;  %v2441_v59 = vld [vmem:[%s5043_s1 + $0x310] sm:$0xf]  ;;  %v30_v11 = vunpack.c.h.bf16 %v18_v57 }
  0x29   :  { %1679 = vmatpush.bf16.msrb.mxu1 %v2418_v55  ;;  %v2377_v55 = vld [vmem:[%s5043_s1 + $0x290] sm:$0xf]  ;;  %v2514_v58 = vor.u32 %v3188_v49, %v2513_v48  ;;  %v3186_v63 = vld [vmem:[%s5043_s1 + $0x394] sm:$0xf0]  ;;  %v2314_v0 = vor.u32 %v3138_v52, %v2313_v51  ;;  %v2305_v1 = vld [vmem:[%s5043_s1 + $0x200] sm:$0xf] }
  0x2a   :  { %1692 = vmatpush.bf16.msrb.mxu2 %v2482_v56  ;;  %v3154_v56 = vld [vmem:[%s5043_s1 + $0x294] sm:$0xf0]  ;;  %v17_v61 = vld [vmem:[%s5042_s0 + $0x10] sm:$0xff]  ;;  %v3136_v2 = vld [vmem:[%s5043_s1 + $0x204] sm:$0xf0]  ;;  %v46_v33 = vmax.f32 %v30_v11, 0.0 }
  0x2b   :  { %1705 = vmatpush.bf16.msrb.mxu3 %v2546_v60  ;;  %v3170_v60 = vld [vmem:[%s5043_s1 + $0x314] sm:$0xf0]  ;;  %v2505_v62 = vld [vmem:[%s5043_s1 + $0x390] sm:$0xf]  ;;  %v2378_v5 = vor.u32 %v3154_v56, %v2377_v55  ;;  %v3152_v7 = vld [vmem:[%s5043_s1 + $0x284] sm:$0xf0]  ;;  %v27_v10 = vunpack.c.l.bf16 %v17_v61  ;;  %v28_v16 = vunpack.c.h.bf16 %v17_v61  ;;  %v2306_v21 = vor.u32 %v3136_v2, %v2305_v1 }
  0x2c   :  { %1667 = vmatpush.bf16.msrb.mxu0 %v2346_v3  ;;  %v2369_v3 = vld [vmem:[%s5043_s1 + $0x280] sm:$0xf]  ;;  %v2442_v6 = vor.u32 %v3170_v60, %v2441_v59  ;;  %v2506_v12 = vor.u32 %v3186_v63, %v2505_v62  ;;  %v3184_v14 = vld [vmem:[%s5043_s1 + $0x384] sm:$0xf0]  ;;  %v3214_v17 = vld [vmem:[%s5043_s1 + $0x474] sm:$0xf0] }
  0x2d   :  { %1680 = vmatpush.bf16.msrb.mxu1 %v2410_v4  ;;  %v29_v4 = vunpack.c.l.bf16 %v18_v57  ;;  %v2433_v8 = vld [vmem:[%s5043_s1 + $0x300] sm:$0xf]  ;;  %v2681_v19 = vld [vmem:[%s5043_s1 + $0x4f0] sm:$0xf]  ;;  %v3230_v20 = vld [vmem:[%s5043_s1 + $0x4f4] sm:$0xf0] }
  0x2e   :  { %1693 = vmatpush.bf16.msrb.mxu2 %v2474_v9  ;;  %v3168_v9 = vld [vmem:[%s5043_s1 + $0x304] sm:$0xf0]  ;;  %v2497_v13 = vld [vmem:[%s5043_s1 + $0x380] sm:$0xf]  ;;  %v2745_v23 = vld [vmem:[%s5043_s1 + $0x570] sm:$0xf]  ;;  %v2682_v37 = vor.u32 %v3230_v20, %v2681_v19 }
  0x2f   :  { %1706 = vmatpush.bf16.msrb.mxu3 %v2538_v15  ;;  %v2617_v15 = vld [vmem:[%s5043_s1 + $0x470] sm:$0xf]  ;;  %v2434_v27 = vor.u32 %v3168_v9, %v2433_v8  ;;  %v3262_v29 = vld [vmem:[%s5043_s1 + $0x5f4] sm:$0xf0]  ;;  %v2498_v34 = vor.u32 %v3184_v14, %v2497_v13  ;;  %v44_v36 = vmax.f32 %v28_v16, 0.0 }
  0x30   :  { %1668 = vmatpush.bf16.msrb.mxu0 %v2338_v24  ;;  %v3246_v24 = vld [vmem:[%s5043_s1 + $0x574] sm:$0xf0]  ;;  %v2809_v28 = vld [vmem:[%s5043_s1 + $0x5f0] sm:$0xf]  ;;  %v2618_v35 = vor.u32 %v3214_v17, %v2617_v15  ;;  %v2673_v41 = vld [vmem:[%s5043_s1 + $0x4e0] sm:$0xf] }
  0x31   :  { %1681 = vmatpush.bf16.msrb.mxu1 %v2402_v25  ;;  %v45_v25 = vmax.f32 %v29_v4, 0.0  ;;  %v2810_v42 = vor.u32 %v3262_v29, %v2809_v28  ;;  %v3228_v43 = vld [vmem:[%s5043_s1 + $0x4e4] sm:$0xf0]  ;;  %v2801_v47 = vld [vmem:[%s5043_s1 + $0x5e0] sm:$0xf]  ;;  %v3837_v52 = vpack.c.bf16 %v44_v36, %v44_v36 }
  0x32   :  { %1694 = vmatpush.bf16.msrb.mxu2 %v2466_v26  ;;  %v2370_v26 = vor.u32 %v3152_v7, %v2369_v3  ;;  %v3244_v45 = vld [vmem:[%s5043_s1 + $0x564] sm:$0xf0]  ;;  %v2601_v55 = vld [vmem:[%s5043_s1 + $0x450] sm:$0xf]  ;;  %v3210_v56 = vld [vmem:[%s5043_s1 + $0x454] sm:$0xf0] }
  0x33   :  { %1707 = vmatpush.bf16.msrb.mxu3 %v2530_v32  ;;  %v43_v32 = vmax.f32 %v27_v10, 0.0  ;;  %v3825_v46 = vpack.c.bf16 %v45_v25, %v45_v25  ;;  %v3260_v48 = vld [vmem:[%s5043_s1 + $0x5e4] sm:$0xf0]  ;;  %v2665_v57 = vld [vmem:[%s5043_s1 + $0x4d0] sm:$0xf] }
  0x34   :  { %1669 = vmatpush.bf16.msrb.mxu0 %v2330_v38  ;;  %v2746_v38 = vor.u32 %v3246_v24, %v2745_v23  ;;  %v3226_v59 = vld [vmem:[%s5043_s1 + $0x4d4] sm:$0xf0]  ;;  %v2729_v60 = vld [vmem:[%s5043_s1 + $0x550] sm:$0xf]  ;;  %v2593_v3 = vld [vmem:[%s5043_s1 + $0x440] sm:$0xf] }
  0x35   :  { %1682 = vmatpush.bf16.msrb.mxu1 %v2394_v39  ;;  %v2609_v39 = vld [vmem:[%s5043_s1 + $0x460] sm:$0xf]  ;;  %v3833_v49 = vpack.c.bf16 %v43_v32, %v43_v32  ;;  %v3242_v61 = vld [vmem:[%s5043_s1 + $0x554] sm:$0xf0]  ;;  %v2793_v62 = vld [vmem:[%s5043_s1 + $0x5d0] sm:$0xf]  ;;  %v2666_v1 = vor.u32 %v3226_v59, %v2665_v57 }
  0x36   :  { %1695 = vmatpush.bf16.msrb.mxu2 %v2458_v40  ;;  %v3212_v40 = vld [vmem:[%s5043_s1 + $0x464] sm:$0xf0]  ;;  %v3258_v63 = vld [vmem:[%s5043_s1 + $0x5d4] sm:$0xf0]  ;;  %v2730_v2 = vor.u32 %v3242_v61, %v2729_v60  ;;  %v2721_v8 = vld [vmem:[%s5043_s1 + $0x540] sm:$0xf] }
  0x37   :  { %1708 = vmatpush.bf16.msrb.mxu3 %v2522_v44  ;;  %v2737_v44 = vld [vmem:[%s5043_s1 + $0x560] sm:$0xf]  ;;  %v2610_v51 = vor.u32 %v3212_v40, %v2609_v39  ;;  %v3208_v4 = vld [vmem:[%s5043_s1 + $0x444] sm:$0xf0]  ;;  %v2585_v15 = vld [vmem:[%s5043_s1 + $0x430] sm:$0xf] }
  0x38   :  { %1670 = vmatpush.bf16.msrb.mxu0 %v2322_v50  ;;  %v3835_v50 = vpack.c.bf16 %v46_v33, %v46_v33  ;;  %v3224_v7 = vld [vmem:[%s5043_s1 + $0x4c4] sm:$0xf0]  ;;  %v2785_v10 = vld [vmem:[%s5043_s1 + $0x5c0] sm:$0xf]  ;;  %v3206_v16 = vld [vmem:[%s5043_s1 + $0x434] sm:$0xf0] }
  0x39   :  { %1683 = vmatpush.bf16.msrb.mxu1 %v2386_v53  ;;  %v2674_v53 = vor.u32 %v3228_v43, %v2673_v41  ;;  %v3240_v9 = vld [vmem:[%s5043_s1 + $0x544] sm:$0xf0]  ;;  %v2649_v17 = vld [vmem:[%s5043_s1 + $0x4b0] sm:$0xf]  ;;  %v3222_v20 = vld [vmem:[%s5043_s1 + $0x4b4] sm:$0xf0] }
  0x3a   :  { %1696 = vmatpush.bf16.msrb.mxu2 %v2450_v54  ;;  %v2738_v54 = vor.u32 %v3244_v45, %v2737_v44  ;;  %v3256_v11 = vld [vmem:[%s5043_s1 + $0x5c4] sm:$0xf0]  ;;  %v2722_v14 = vor.u32 %v3240_v9, %v2721_v8  ;;  %v3238_v23 = vld [vmem:[%s5043_s1 + $0x534] sm:$0xf0]  ;;  %v2777_v24 = vld [vmem:[%s5043_s1 + $0x5b0] sm:$0xf] }
  0x3b   :  { %1709 = vmatpush.bf16.msrb.mxu3 %v2514_v58  ;;  %v2802_v58 = vor.u32 %v3260_v48, %v2801_v47  ;;  %v2786_v19 = vor.u32 %v3256_v11, %v2785_v10  ;;  %v3254_v25 = vld [vmem:[%s5043_s1 + $0x5b4] sm:$0xf0]  ;;  %v2577_v29 = vld [vmem:[%s5043_s1 + $0x420] sm:$0xf]  ;;  %v3204_v32 = vld [vmem:[%s5043_s1 + $0x424] sm:$0xf0] }
  0x3c   :  { %1671 = vmatpush.bf16.msrb.mxu0 %v2314_v0  ;;  %v2602_v0 = vor.u32 %v3210_v56, %v2601_v55  ;;  %v2641_v33 = vld [vmem:[%s5043_s1 + $0x4a0] sm:$0xf]  ;;  %v3252_v39 = vld [vmem:[%s5043_s1 + $0x5a4] sm:$0xf0]  ;;  %v2578_v40 = vor.u32 %v3204_v32, %v2577_v29  ;;  %v2569_v41 = vld [vmem:[%s5043_s1 + $0x410] sm:$0xf] }
  0x3d   :  { %1684 = vmatpush.bf16.msrb.mxu1 %v2378_v5  ;;  %v2657_v5 = vld [vmem:[%s5043_s1 + $0x4c0] sm:$0xf]  ;;  %v2633_v45 = vld [vmem:[%s5043_s1 + $0x490] sm:$0xf]  ;;  %v3218_v47 = vld [vmem:[%s5043_s1 + $0x494] sm:$0xf0] }
  0x3e   :  { %1697 = vmatpush.bf16.msrb.mxu2 %v2442_v6  ;;  %v2794_v6 = vor.u32 %v3258_v63, %v2793_v62  ;;  %v2658_v13 = vor.u32 %v3224_v7, %v2657_v5  ;;  %v2705_v36 = vld [vmem:[%s5043_s1 + $0x520] sm:$0xf]  ;;  %v20_v55 = vld [vmem:[%s5042_s0 + $0x28] sm:$0xff]  ;;  %v2761_v56 = vld [vmem:[%s5043_s1 + $0x590] sm:$0xf] }
  0x3f   :  { %1710 = vmatpush.bf16.msrb.mxu3 %v2506_v12  ;;  %v2594_v12 = vor.u32 %v3208_v4, %v2593_v3  ;;  %v19_v48 = vld [vmem:[%s5042_s0 + $0x20] sm:$0xff]  ;;  %v3250_v57 = vld [vmem:[%s5043_s1 + $0x594] sm:$0xf0]  ;;  %v3200_v60 = vld [vmem:[%s5043_s1 + $0x404] sm:$0xf0]  ;;  %v33_v5 = vunpack.c.l.bf16 %v20_v55  ;;  %v34_v11 = vunpack.c.h.bf16 %v20_v55 }
  0x40   :  { %1672 = vmatpush.bf16.msrb.mxu0 %v2306_v21  ;;  %v2713_v21 = vld [vmem:[%s5043_s1 + $0x530] sm:$0xf]  ;;  %v2625_v61 = vld [vmem:[%s5043_s1 + $0x480] sm:$0xf]  ;;  %v3216_v62 = vld [vmem:[%s5043_s1 + $0x484] sm:$0xf0]  ;;  %v31_v63 = vunpack.c.l.bf16 %v19_v48  ;;  %v2762_v7 = vor.u32 %v3250_v57, %v2761_v56 }
  0x41   :  { %1685 = vmatpush.bf16.msrb.mxu1 %v2370_v26  ;;  %v2586_v26 = vor.u32 %v3206_v16, %v2585_v15  ;;  %v2714_v28 = vor.u32 %v3238_v23, %v2713_v21  ;;  %v3232_v3 = vld [vmem:[%s5043_s1 + $0x504] sm:$0xf0]  ;;  %v2753_v4 = vld [vmem:[%s5043_s1 + $0x580] sm:$0xf]  ;;  %v2873_v9 = vld [vmem:[%s5043_s1 + $0x670] sm:$0xf] }
  0x42   :  { %1698 = vmatpush.bf16.msrb.mxu2 %v2434_v27  ;;  %v2650_v27 = vor.u32 %v3222_v20, %v2649_v17  ;;  %v3248_v8 = vld [vmem:[%s5043_s1 + $0x584] sm:$0xf0]  ;;  %v3278_v10 = vld [vmem:[%s5043_s1 + $0x674] sm:$0xf0] }
  0x43   :  { %1711 = vmatpush.bf16.msrb.mxu3 %v2498_v34  ;;  %1673 = vmatmul.bf16.vlgmr.msrb.gmra.mxu0 %v3833_v49  ;;  %v2778_v34 = vor.u32 %v3254_v25, %v2777_v24 }
  0x44   :  { %1717 = vmatpush.bf16.msra.mxu0 %v2618_v35  ;;  %1686 = vmatmul.bf16.vlgmr.msrb.gmra.mxu1 %v3837_v52  ;;  %v3220_v35 = vld [vmem:[%s5043_s1 + $0x4a4] sm:$0xf0] }
  0x45   :  { %1730 = vmatpush.bf16.msra.mxu1 %v2682_v37  ;;  %1699 = vmatmul.bf16.vlgmr.msrb.gmra.mxu2 %v3825_v46  ;;  %v3236_v37 = vld [vmem:[%s5043_s1 + $0x524] sm:$0xf0]  ;;  %v2642_v43 = vor.u32 %v3220_v35, %v2641_v33 }
  0x46   :  { %1743 = vmatpush.bf16.msra.mxu2 %v2746_v38  ;;  %1712 = vmatmul.bf16.vlgmr.msrb.gmra.mxu3 %v3835_v50  ;;  %v2769_v38 = vld [vmem:[%s5043_s1 + $0x5a0] sm:$0xf]  ;;  %v2706_v44 = vor.u32 %v3236_v37, %v2705_v36 }
  0x47   :  { %1756 = vmatpush.bf16.msra.mxu3 %v2810_v42  ;;  %v3202_v42 = vld [vmem:[%s5043_s1 + $0x414] sm:$0xf0] }
  0x48   :  { %1718 = vmatpush.bf16.msra.mxu0 %v2610_v51  ;;  %v2770_v51 = vor.u32 %v3252_v39, %v2769_v38  ;;  %v2570_v59 = vor.u32 %v3202_v42, %v2569_v41 }
  0x49   :  { %1731 = vmatpush.bf16.msra.mxu1 %v2674_v53  ;;  %v2697_v53 = vld [vmem:[%s5043_s1 + $0x510] sm:$0xf] }
  0x4a   :  { %1744 = vmatpush.bf16.msra.mxu2 %v2738_v54  ;;  %v3234_v54 = vld [vmem:[%s5043_s1 + $0x514] sm:$0xf0] }
  0x4b   :  { %1757 = vmatpush.bf16.msra.mxu3 %v2802_v58  ;;  %v2561_v58 = vld [vmem:[%s5043_s1 + $0x400] sm:$0xf] }
  0x4c   :  { %1719 = vmatpush.bf16.msra.mxu0 %v2602_v0  ;;  %v2634_v0 = vor.u32 %v3218_v47, %v2633_v45 }
  0x4d   :  { %1732 = vmatpush.bf16.msra.mxu1 %v2666_v1  ;;  %v2698_v1 = vor.u32 %v3234_v54, %v2697_v53 }
  0x4e   :  { %1745 = vmatpush.bf16.msra.mxu2 %v2730_v2  ;;  %v2689_v2 = vld [vmem:[%s5043_s1 + $0x500] sm:$0xf] }
  0x4f   :  { %1758 = vmatpush.bf16.msra.mxu3 %v2794_v6  ;;  %v32_v6 = vunpack.c.h.bf16 %v19_v48 }
  0x50   :  { %1720 = vmatpush.bf16.msra.mxu0 %v2594_v12  ;;  %v2937_v12 = vld [vmem:[%s5043_s1 + $0x6f0] sm:$0xf] }
  0x51   :  { %1733 = vmatpush.bf16.msra.mxu1 %v2658_v13  ;;  %v3294_v13 = vld [vmem:[%s5043_s1 + $0x6f4] sm:$0xf0] }
  0x52   :  { %1746 = vmatpush.bf16.msra.mxu2 %v2722_v14 }
  0x53   :  { %1759 = vmatpush.bf16.msra.mxu3 %v2786_v19 }
  0x54   :  { %1721 = vmatpush.bf16.msra.mxu0 %v2586_v26 }
  0x55   :  { %1734 = vmatpush.bf16.msra.mxu1 %v2650_v27 }
  0x56   :  { %1747 = vmatpush.bf16.msra.mxu2 %v2714_v28 }
  0x57   :  { %1760 = vmatpush.bf16.msra.mxu3 %v2778_v34 }
  0x58   :  { %1722 = vmatpush.bf16.msra.mxu0 %v2578_v40 }
  0x59   :  { %1735 = vmatpush.bf16.msra.mxu1 %v2642_v43 }
  0x5a   :  { %1748 = vmatpush.bf16.msra.mxu2 %v2706_v44 }
  0x5b   :  { %1761 = vmatpush.bf16.msra.mxu3 %v2770_v51 }
  0x5c   :  { %8 = vsyncpa [#allocation3], 0  ;;  %1723 = vmatpush.bf16.msra.mxu0 %v2570_v59  ;;  %v2562_v14 = vor.u32 %v3200_v60, %v2561_v58  ;;  %v3001_v15 = vld [vmem:[%s5043_s1 + $0x770] sm:$0xf]  ;;  %v3310_v16 = vld [vmem:[%s5043_s1 + $0x774] sm:$0xf0]  ;;  %v2626_v19 = vor.u32 %v3216_v62, %v2625_v61  ;;  %v2690_v20 = vor.u32 %v3232_v3, %v2689_v2  ;;  %v2754_v26 = vor.u32 %v3248_v8, %v2753_v4 }
  0x5d   :  { %v47_v17 = vmax.f32 %v31_v63, 0.0  ;;  %1736 = vmatpush.bf16.msra.mxu1 %v2634_v0  ;;  %v3065_v21 = vld [vmem:[%s5043_s1 + $0x7f0] sm:$0xf]  ;;  %v3326_v23 = vld [vmem:[%s5043_s1 + $0x7f4] sm:$0xf0]  ;;  %v49_v24 = vmax.f32 %v33_v5, 0.0  ;;  %v2874_v27 = vor.u32 %v3278_v10, %v2873_v9  ;;  %v2938_v29 = vor.u32 %v3294_v13, %v2937_v12 }
  0x5e   :  { %1749 = vmatpush.bf16.msra.mxu2 %v2698_v1  ;;  %v48_v25 = vmax.f32 %v32_v6, 0.0  ;;  %v50_v28 = vmax.f32 %v34_v11, 0.0  ;;  %v3002_v32 = vor.u32 %v3310_v16, %v3001_v15  ;;  %v2865_v33 = vld [vmem:[%s5043_s1 + $0x660] sm:$0xf]  ;;  %v3276_v34 = vld [vmem:[%s5043_s1 + $0x664] sm:$0xf0]  ;;  %v3066_v36 = vor.u32 %v3326_v23, %v3065_v21 }
  0x5f   :  { %1762 = vmatpush.bf16.msra.mxu3 %v2762_v7  ;;  %v2929_v35 = vld [vmem:[%s5043_s1 + $0x6e0] sm:$0xf]  ;;  %v4026_v37 = vpack.c.bf16 %v47_v17, %v47_v17  ;;  %v3292_v38 = vld [vmem:[%s5043_s1 + $0x6e4] sm:$0xf0]  ;;  %v4037_v41 = vpack.c.bf16 %v49_v24, %v49_v24  ;;  %v2866_v47 = vor.u32 %v3276_v34, %v2865_v33  ;;  %v2857_v53 = vld [vmem:[%s5043_s1 + $0x650] sm:$0xf] }
  0x60   :  { %1724 = vmatpush.bf16.msra.mxu0 %v2562_v14  ;;  %v2993_v39 = vld [vmem:[%s5043_s1 + $0x760] sm:$0xf]  ;;  %v3308_v40 = vld [vmem:[%s5043_s1 + $0x764] sm:$0xf0]  ;;  %v4039_v42 = vpack.c.bf16 %v48_v25, %v48_v25  ;;  %v4047_v45 = vpack.c.bf16 %v50_v28, %v50_v28  ;;  %v2930_v48 = vor.u32 %v3292_v38, %v2929_v35  ;;  %v3274_v54 = vld [vmem:[%s5043_s1 + $0x654] sm:$0xf0] }
  0x61   :  { %1737 = vmatpush.bf16.msra.mxu1 %v2626_v19  ;;  %v3057_v43 = vld [vmem:[%s5043_s1 + $0x7e0] sm:$0xf]  ;;  %v3324_v44 = vld [vmem:[%s5043_s1 + $0x7e4] sm:$0xf0]  ;;  %v2994_v51 = vor.u32 %v3308_v40, %v2993_v39  ;;  %v2921_v55 = vld [vmem:[%s5043_s1 + $0x6d0] sm:$0xf]  ;;  %v2858_v62 = vor.u32 %v3274_v54, %v2857_v53 }
  0x62   :  { %1750 = vmatpush.bf16.msra.mxu2 %v2690_v20  ;;  %v3058_v56 = vor.u32 %v3324_v44, %v3057_v43  ;;  %v3290_v57 = vld [vmem:[%s5043_s1 + $0x6d4] sm:$0xf0]  ;;  %v2985_v58 = vld [vmem:[%s5043_s1 + $0x750] sm:$0xf]  ;;  %v2849_v1 = vld [vmem:[%s5043_s1 + $0x640] sm:$0xf] }
  0x63   :  { %1763 = vmatpush.bf16.msra.mxu3 %v2754_v26  ;;  %1725 = vmatmul.bf16.vlgmr.msra.gmra.mxu0 %v4026_v37  ;;  %v3306_v59 = vld [vmem:[%s5043_s1 + $0x754] sm:$0xf0]  ;;  %v3049_v60 = vld [vmem:[%s5043_s1 + $0x7d0] sm:$0xf]  ;;  %v2922_v63 = vor.u32 %v3290_v57, %v2921_v55  ;;  %v3272_v2 = vld [vmem:[%s5043_s1 + $0x644] sm:$0xf0] }
  0x64   :  { %1769 = vmatpush.bf16.msrb.mxu0 %v2874_v27  ;;  %1738 = vmatmul.bf16.vlgmr.msra.gmra.mxu1 %v4039_v42  ;;  %v3322_v61 = vld [vmem:[%s5043_s1 + $0x7d4] sm:$0xf0]  ;;  %v2986_v0 = vor.u32 %v3306_v59, %v2985_v58  ;;  %v2913_v3 = vld [vmem:[%s5043_s1 + $0x6c0] sm:$0xf]  ;;  %v3288_v5 = vld [vmem:[%s5043_s1 + $0x6c4] sm:$0xf0]  ;;  %v2850_v10 = vor.u32 %v3272_v2, %v2849_v1 }
  0x65   :  { %1782 = vmatpush.bf16.msrb.mxu1 %v2938_v29  ;;  %1751 = vmatmul.bf16.vlgmr.msra.gmra.mxu2 %v4037_v41  ;;  %v3050_v4 = vor.u32 %v3322_v61, %v3049_v60  ;;  %v2977_v6 = vld [vmem:[%s5043_s1 + $0x740] sm:$0xf]  ;;  %v3304_v7 = vld [vmem:[%s5043_s1 + $0x744] sm:$0xf0]  ;;  %v2914_v11 = vor.u32 %v3288_v5, %v2913_v3  ;;  %v2841_v13 = vld [vmem:[%s5043_s1 + $0x630] sm:$0xf] }
  0x66   :  { %1795 = vmatpush.bf16.msrb.mxu2 %v3002_v32  ;;  %1764 = vmatmul.bf16.vlgmr.msra.gmra.mxu3 %v4047_v45  ;;  %v3041_v8 = vld [vmem:[%s5043_s1 + $0x7c0] sm:$0xf]  ;;  %v3320_v9 = vld [vmem:[%s5043_s1 + $0x7c4] sm:$0xf0]  ;;  %v2978_v12 = vor.u32 %v3304_v7, %v2977_v6  ;;  %v3270_v14 = vld [vmem:[%s5043_s1 + $0x634] sm:$0xf0] }
  0x67   :  { %1808 = vmatpush.bf16.msrb.mxu3 %v3066_v36  ;;  %v2905_v15 = vld [vmem:[%s5043_s1 + $0x6b0] sm:$0xf]  ;;  %v3042_v16 = vor.u32 %v3320_v9, %v3041_v8  ;;  %v3286_v17 = vld [vmem:[%s5043_s1 + $0x6b4] sm:$0xf0]  ;;  %v2842_v24 = vor.u32 %v3270_v14, %v2841_v13  ;;  %v2833_v27 = vld [vmem:[%s5043_s1 + $0x620] sm:$0xf] }
  0x68   :  { %1770 = vmatpush.bf16.msrb.mxu0 %v2866_v47  ;;  %v2969_v19 = vld [vmem:[%s5043_s1 + $0x730] sm:$0xf]  ;;  %v3302_v20 = vld [vmem:[%s5043_s1 + $0x734] sm:$0xf0]  ;;  %v2906_v25 = vor.u32 %v3286_v17, %v2905_v15  ;;  %v3268_v28 = vld [vmem:[%s5043_s1 + $0x624] sm:$0xf0] }
  0x69   :  { %1783 = vmatpush.bf16.msrb.mxu1 %v2930_v48  ;;  %v3033_v21 = vld [vmem:[%s5043_s1 + $0x7b0] sm:$0xf]  ;;  %v3318_v23 = vld [vmem:[%s5043_s1 + $0x7b4] sm:$0xf0]  ;;  %v2970_v26 = vor.u32 %v3302_v20, %v2969_v19  ;;  %v2897_v29 = vld [vmem:[%s5043_s1 + $0x6a0] sm:$0xf]  ;;  %v2834_v39 = vor.u32 %v3268_v28, %v2833_v27 }
  0x6a   :  { %1796 = vmatpush.bf16.msrb.mxu2 %v2994_v51  ;;  %v3034_v32 = vor.u32 %v3318_v23, %v3033_v21  ;;  %v3284_v33 = vld [vmem:[%s5043_s1 + $0x6a4] sm:$0xf0]  ;;  %v2961_v34 = vld [vmem:[%s5043_s1 + $0x720] sm:$0xf]  ;;  %v2825_v40 = vld [vmem:[%s5043_s1 + $0x610] sm:$0xf] }
  0x6b   :  { %1809 = vmatpush.bf16.msrb.mxu3 %v3058_v56  ;;  %v3300_v35 = vld [vmem:[%s5043_s1 + $0x724] sm:$0xf0]  ;;  %v3025_v36 = vld [vmem:[%s5043_s1 + $0x7a0] sm:$0xf]  ;;  %v3266_v43 = vld [vmem:[%s5043_s1 + $0x614] sm:$0xf0]  ;;  %v2898_v44 = vor.u32 %v3284_v33, %v2897_v29 }
  0x6c   :  { %1771 = vmatpush.bf16.msrb.mxu0 %v2858_v62  ;;  %v3316_v38 = vld [vmem:[%s5043_s1 + $0x7a4] sm:$0xf0]  ;;  %v2962_v47 = vor.u32 %v3300_v35, %v2961_v34  ;;  %v2889_v48 = vld [vmem:[%s5043_s1 + $0x690] sm:$0xf]  ;;  %v3282_v51 = vld [vmem:[%s5043_s1 + $0x694] sm:$0xf0]  ;;  %v2826_v60 = vor.u32 %v3266_v43, %v2825_v40 }
  0x6d   :  { %1784 = vmatpush.bf16.msrb.mxu1 %v2922_v63  ;;  %v21_v53 = vld [vmem:[%s5042_s0 + $0x30] sm:$0xff]  ;;  %v3026_v54 = vor.u32 %v3316_v38, %v3025_v36  ;;  %v3298_v56 = vld [vmem:[%s5043_s1 + $0x714] sm:$0xf0]  ;;  %v2817_v61 = vld [vmem:[%s5043_s1 + $0x600] sm:$0xf]  ;;  %v2890_v1 = vor.u32 %v3282_v51, %v2889_v48  ;;  %s2038_s6 = sshll.u32 %s5045_s3, 4  ;;  %s2039_s6 = int_to_ptr.hbm [resolvable:$true] %s2038_s6 }
  0x6e   :  { %1797 = vmatpush.bf16.msrb.mxu2 %v2986_v0  ;;  %v2953_v55 = vld [vmem:[%s5043_s1 + $0x710] sm:$0xf]  ;;  %v22_v57 = vld [vmem:[%s5042_s0 + $0x38] sm:$0xff]  ;;  %v3264_v62 = vld [vmem:[%s5043_s1 + $0x604] sm:$0xf0]  ;;  %v35_v0 = vunpack.c.l.bf16 %v21_v53  ;;  %v36_v7 = vunpack.c.h.bf16 %v21_v53 }
  0x6f   :  { %1810 = vmatpush.bf16.msrb.mxu3 %v3050_v4  ;;  %v3017_v58 = vld [vmem:[%s5043_s1 + $0x790] sm:$0xf]  ;;  %v3314_v59 = vld [vmem:[%s5043_s1 + $0x794] sm:$0xf0]  ;;  %v2881_v63 = vld [vmem:[%s5043_s1 + $0x680] sm:$0xf]  ;;  %v2954_v2 = vor.u32 %v3298_v56, %v2953_v55  ;;  %v37_v6 = vunpack.c.l.bf16 %v22_v57 }
  0x70   :  { %1772 = vmatpush.bf16.msrb.mxu0 %v2850_v10  ;;  %v3280_v3 = vld [vmem:[%s5043_s1 + $0x684] sm:$0xf0]  ;;  %v2945_v4 = vld [vmem:[%s5043_s1 + $0x700] sm:$0xf]  ;;  %v3018_v8 = vor.u32 %v3314_v59, %v3017_v58  ;;  %v2107_v13 = vld [vmem:[%s5043_s1 + $0x78] sm:$0xf0] }
  0x71   :  { %1785 = vmatpush.bf16.msrb.mxu1 %v2914_v11  ;;  %v3296_v5 = vld [vmem:[%s5043_s1 + $0x704] sm:$0xf0]  ;;  %v3009_v9 = vld [vmem:[%s5043_s1 + $0x780] sm:$0xf]  ;;  %v3085_v11 = vld [vmem:[%s5043_s1 + $0x74] sm:$0xf]  ;;  %v2882_v21 = vor.u32 %v3280_v3, %v2881_v63 }
  0x72   :  { %1798 = vmatpush.bf16.msrb.mxu2 %v2978_v12  ;;  %v3312_v10 = vld [vmem:[%s5043_s1 + $0x784] sm:$0xf0]  ;;  %v38_v12 = vunpack.c.h.bf16 %v22_v57  ;;  %v3101_v14 = vld [vmem:[%s5043_s1 + $0xf4] sm:$0xf]  ;;  %v2171_v15 = vld [vmem:[%s5043_s1 + $0xf8] sm:$0xf0]  ;;  %v2946_v23 = vor.u32 %v3296_v5, %v2945_v4  ;;  %v2110_v29 = vor.u32 %v3085_v11, %v2107_v13 }
  0x73   :  { %1811 = vmatpush.bf16.msrb.mxu3 %v3042_v16  ;;  %v2818_v16 = vor.u32 %v3264_v62, %v2817_v61  ;;  %v3117_v17 = vld [vmem:[%s5043_s1 + $0x174] sm:$0xf]  ;;  %v2235_v19 = vld [vmem:[%s5043_s1 + $0x178] sm:$0xf0]  ;;  %v51_v20 = vmax.f32 %v35_v0, 0.0  ;;  %v52_v27 = vmax.f32 %v36_v7, 0.0  ;;  %v3010_v28 = vor.u32 %v3312_v10, %v3009_v9 }
  0x74   :  { %1773 = vmatpush.bf16.msrb.mxu0 %v2842_v24  ;;  %v3133_v24 = vld [vmem:[%s5043_s1 + $0x1f4] sm:$0xf]  ;;  %v2174_v33 = vor.u32 %v3101_v14, %v2171_v15  ;;  %v2238_v34 = vor.u32 %v3117_v17, %v2235_v19  ;;  %v3083_v35 = vld [vmem:[%s5043_s1 + $0x64] sm:$0xf]  ;;  %v2099_v36 = vld [vmem:[%s5043_s1 + $0x68] sm:$0xf0] }
  0x75   :  { %1786 = vmatpush.bf16.msrb.mxu1 %v2906_v25  ;;  %v2299_v25 = vld [vmem:[%s5043_s1 + $0x1f8] sm:$0xf0]  ;;  %v3099_v38 = vld [vmem:[%s5043_s1 + $0xe4] sm:$0xf]  ;;  %v4236_v40 = vpack.c.bf16 %v51_v20, %v51_v20  ;;  %v2163_v43 = vld [vmem:[%s5043_s1 + $0xe8] sm:$0xf0]  ;;  %v4249_v51 = vpack.c.bf16 %v52_v27, %v52_v27  ;;  %v2102_v56 = vor.u32 %v3083_v35, %v2099_v36 }
  0x76   :  { %1799 = vmatpush.bf16.msrb.mxu2 %v2970_v26  ;;  %v53_v26 = vmax.f32 %v37_v6, 0.0  ;;  %v3131_v53 = vld [vmem:[%s5043_s1 + $0x1e4] sm:$0xf]  ;;  %v2166_v57 = vor.u32 %v3099_v38, %v2163_v43  ;;  %v3081_v59 = vld [vmem:[%s5043_s1 + $0x54] sm:$0xf] }
  0x77   :  { %1812 = vmatpush.bf16.msrb.mxu3 %v3034_v32  ;;  %v54_v32 = vmax.f32 %v38_v12, 0.0  ;;  %v3097_v61 = vld [vmem:[%s5043_s1 + $0xd4] sm:$0xf]  ;;  %v2155_v63 = vld [vmem:[%s5043_s1 + $0xd8] sm:$0xf0] }
  0x78   :  { %1774 = vmatpush.bf16.msrb.mxu0 %v2834_v39  ;;  %v2302_v39 = vor.u32 %v3133_v24, %v2299_v25  ;;  %v4247_v48 = vpack.c.bf16 %v53_v26, %v53_v26  ;;  %v3113_v0 = vld [vmem:[%s5043_s1 + $0x154] sm:$0xf]  ;;  %v2283_v3 = vld [vmem:[%s5043_s1 + $0x1d8] sm:$0xf0]  ;;  %v2158_v5 = vor.u32 %v3097_v61, %v2155_v63  ;;  %v3079_v7 = vld [vmem:[%s5043_s1 + $0x44] sm:$0xf] }
  0x79   :  { %1787 = vmatpush.bf16.msrb.mxu1 %v2898_v44  ;;  %v3115_v44 = vld [vmem:[%s5043_s1 + $0x164] sm:$0xf]  ;;  %v4257_v55 = vpack.c.bf16 %v54_v32, %v54_v32  ;;  %v2147_v11 = vld [vmem:[%s5043_s1 + $0xc8] sm:$0xf0]  ;;  %v3077_v20 = vld [vmem:[%s5043_s1 + $0x34] sm:$0xf] }
  0x7a   :  { %1800 = vmatpush.bf16.msrb.mxu2 %v2962_v47  ;;  %v2227_v47 = vld [vmem:[%s5043_s1 + $0x168] sm:$0xf0]  ;;  %v3095_v9 = vld [vmem:[%s5043_s1 + $0xc4] sm:$0xf]  ;;  %v2139_v25 = vld [vmem:[%s5043_s1 + $0xb8] sm:$0xf0] }
  0x7b   :  { %1813 = vmatpush.bf16.msrb.mxu3 %v3026_v54  ;;  %v2291_v54 = vld [vmem:[%s5043_s1 + $0x1e8] sm:$0xf0]  ;;  %v2230_v58 = vor.u32 %v3115_v44, %v2227_v47  ;;  %v3111_v12 = vld [vmem:[%s5043_s1 + $0x144] sm:$0xf]  ;;  %v2150_v17 = vor.u32 %v3095_v9, %v2147_v11  ;;  %v3109_v26 = vld [vmem:[%s5043_s1 + $0x134] sm:$0xf] }
  0x7c   :  { %1775 = vmatpush.bf16.msrb.mxu0 %v2826_v60  ;;  %v2091_v60 = vld [vmem:[%s5043_s1 + $0x58] sm:$0xf0]  ;;  %v2294_v62 = vor.u32 %v3131_v53, %v2291_v54  ;;  %v2211_v13 = vld [vmem:[%s5043_s1 + $0x148] sm:$0xf0]  ;;  %v3127_v14 = vld [vmem:[%s5043_s1 + $0x1c4] sm:$0xf] }
  0x7d   :  { %1788 = vmatpush.bf16.msrb.mxu1 %v2890_v1  ;;  %v2219_v1 = vld [vmem:[%s5043_s1 + $0x158] sm:$0xf0]  ;;  %v2094_v4 = vor.u32 %v3081_v59, %v2091_v60  ;;  %v2275_v15 = vld [vmem:[%s5043_s1 + $0x1c8] sm:$0xf0]  ;;  %v2214_v19 = vor.u32 %v3111_v12, %v2211_v13  ;;  %v3075_v35 = vld [vmem:[%s5043_s1 + $0x24] sm:$0xf] }
  0x7e   :  { %1801 = vmatpush.bf16.msrb.mxu2 %v2954_v2  ;;  %v3129_v2 = vld [vmem:[%s5043_s1 + $0x1d4] sm:$0xf]  ;;  %v2222_v6 = vor.u32 %v3113_v0, %v2219_v1  ;;  %v2278_v24 = vor.u32 %v3127_v14, %v2275_v15  ;;  %v2203_v27 = vld [vmem:[%s5043_s1 + $0x138] sm:$0xf0]  ;;  %v2067_v36 = vld [vmem:[%s5043_s1 + $0x28] sm:$0xf0] }
  0x7f   :  { %1814 = vmatpush.bf16.msrb.mxu3 %v3018_v8  ;;  %v2083_v8 = vld [vmem:[%s5043_s1 + $0x48] sm:$0xf0]  ;;  %v2286_v10 = vor.u32 %v3129_v2, %v2283_v3  ;;  %v3091_v38 = vld [vmem:[%s5043_s1 + $0xa4] sm:$0xf]  ;;  %v3073_v59 = vld [vmem:[%s5043_s1 + $0x14] sm:$0xf] }
  0x80   :  { %1776 = vmatpush.bf16.msrb.mxu0 %v2818_v16  ;;  %v2086_v16 = vor.u32 %v3079_v7, %v2083_v8  ;;  %v2131_v43 = vld [vmem:[%s5043_s1 + $0xa8] sm:$0xf0]  ;;  %v3107_v44 = vld [vmem:[%s5043_s1 + $0x124] sm:$0xf]  ;;  %v2059_v60 = vld [vmem:[%s5043_s1 + $0x18] sm:$0xf0] }
  0x81   :  { %1789 = vmatpush.bf16.msrb.mxu1 %v2882_v21  ;;  %v2075_v21 = vld [vmem:[%s5043_s1 + $0x38] sm:$0xf0]  ;;  %v2195_v47 = vld [vmem:[%s5043_s1 + $0x128] sm:$0xf0]  ;;  %v3123_v53 = vld [vmem:[%s5043_s1 + $0x1a4] sm:$0xf] }
  0x82   :  { %1802 = vmatpush.bf16.msrb.mxu2 %v2946_v23  ;;  %v3093_v23 = vld [vmem:[%s5043_s1 + $0xb4] sm:$0xf]  ;;  %v2078_v32 = vor.u32 %v3077_v20, %v2075_v21  ;;  %v2259_v54 = vld [vmem:[%s5043_s1 + $0x1a8] sm:$0xf0]  ;;  %v2123_v63 = vld [vmem:[%s5043_s1 + $0x98] sm:$0xf0] }
  0x83   :  { %1815 = vmatpush.bf16.msrb.mxu3 %v3010_v28  ;;  %1777 = vmatmul.bf16.vlgmr.msrb.gmra.mxu0 %v4236_v40  ;;  %v3125_v28 = vld [vmem:[%s5043_s1 + $0x1b4] sm:$0xf]  ;;  %v2187_v1 = vld [vmem:[%s5043_s1 + $0x118] sm:$0xf0]  ;;  %v3087_v9 = vld [vmem:[%s5043_s1 + $0x84] sm:$0xf] }
  0x84   :  { %1821 = vmatpush.bf16.msra.mxu0 %v2110_v29  ;;  %1790 = vmatmul.bf16.vlgmr.msrb.gmra.mxu1 %v4249_v51  ;;  %v2267_v29 = vld [vmem:[%s5043_s1 + $0x1b8] sm:$0xf0]  ;;  %v3089_v61 = vld [vmem:[%s5043_s1 + $0x94] sm:$0xf]  ;;  %v3103_v11 = vld [vmem:[%s5043_s1 + $0x104] sm:$0xf] }
  0x85   :  { %1834 = vmatpush.bf16.msra.mxu1 %v2174_v33  ;;  %1803 = vmatmul.bf16.vlgmr.msrb.gmra.mxu2 %v4247_v48  ;;  %v2142_v33 = vor.u32 %v3093_v23, %v2139_v25  ;;  %v3105_v0 = vld [vmem:[%s5043_s1 + $0x114] sm:$0xf]  ;;  %v2251_v3 = vld [vmem:[%s5043_s1 + $0x198] sm:$0xf0]  ;;  %v2126_v7 = vor.u32 %v3089_v61, %v2123_v63  ;;  %v2179_v13 = vld [vmem:[%s5043_s1 + $0x108] sm:$0xf0] }
  0x86   :  { %1847 = vmatpush.bf16.msra.mxu2 %v2238_v34  ;;  %1816 = vmatmul.bf16.vlgmr.msrb.gmra.mxu3 %v4257_v55  ;;  %v2206_v34 = vor.u32 %v3109_v26, %v2203_v27  ;;  %v3121_v2 = vld [vmem:[%s5043_s1 + $0x194] sm:$0xf]  ;;  %v2190_v8 = vor.u32 %v3105_v0, %v2187_v1  ;;  %v3119_v14 = vld [vmem:[%s5043_s1 + $0x184] sm:$0xf]  ;;  %v2243_v15 = vld [vmem:[%s5043_s1 + $0x188] sm:$0xf0]  ;;  %v2182_v26 = vor.u32 %v3103_v11, %v2179_v13 }
  0x87   :  { %1860 = vmatpush.bf16.msra.mxu3 %v2302_v39  ;;  %v2270_v39 = vor.u32 %v3125_v28, %v2267_v29  ;;  %v2254_v12 = vor.u32 %v3121_v2, %v2251_v3  ;;  %v2427_v21 = vld [vmem:[%s5043_s1 + $0x2f8] sm:$0xf0]  ;;  %v3181_v23 = vld [vmem:[%s5043_s1 + $0x374] sm:$0xf]  ;;  %v2246_v29 = vor.u32 %v3119_v14, %v2243_v15  ;;  %v2531_v11 = vld [vmem:[%s5043_s1 + $0x3c8] sm:$0xf0] }
  0x88   :  { %1822 = vmatpush.bf16.msra.mxu0 %v2102_v56  ;;  %v2070_v56 = vor.u32 %v3075_v35, %v2067_v36  ;;  %v3197_v27 = vld [vmem:[%s5043_s1 + $0x3f4] sm:$0xf]  ;;  %v2555_v28 = vld [vmem:[%s5043_s1 + $0x3f8] sm:$0xf0]  ;;  %v3147_v35 = vld [vmem:[%s5043_s1 + $0x264] sm:$0xf] }
  0x89   :  { %1835 = vmatpush.bf16.msra.mxu1 %v2166_v57  ;;  %v2134_v57 = vor.u32 %v3091_v38, %v2131_v43  ;;  %v2355_v36 = vld [vmem:[%s5043_s1 + $0x268] sm:$0xf0]  ;;  %v3163_v38 = vld [vmem:[%s5043_s1 + $0x2e4] sm:$0xf]  ;;  %v3161_v61 = vld [vmem:[%s5043_s1 + $0x2d4] sm:$0xf] }
  0x8a   :  { %1848 = vmatpush.bf16.msra.mxu2 %v2230_v58  ;;  %v2198_v58 = vor.u32 %v3107_v44, %v2195_v47  ;;  %v2419_v43 = vld [vmem:[%s5043_s1 + $0x2e8] sm:$0xf0]  ;;  %v3179_v44 = vld [vmem:[%s5043_s1 + $0x364] sm:$0xf]  ;;  %v2411_v63 = vld [vmem:[%s5043_s1 + $0x2d8] sm:$0xf0] }
  0x8b   :  { %1861 = vmatpush.bf16.msra.mxu3 %v2294_v62  ;;  %v2262_v62 = vor.u32 %v3123_v53, %v2259_v54  ;;  %v2483_v47 = vld [vmem:[%s5043_s1 + $0x368] sm:$0xf0]  ;;  %v3195_v53 = vld [vmem:[%s5043_s1 + $0x3e4] sm:$0xf]  ;;  %v3177_v0 = vld [vmem:[%s5043_s1 + $0x354] sm:$0xf] }
  0x8c   :  { %1823 = vmatpush.bf16.msra.mxu0 %v2094_v4  ;;  %v2062_v4 = vor.u32 %v3073_v59, %v2059_v60  ;;  %v2547_v54 = vld [vmem:[%s5043_s1 + $0x3e8] sm:$0xf0]  ;;  %v3145_v59 = vld [vmem:[%s5043_s1 + $0x254] sm:$0xf]  ;;  %v2347_v60 = vld [vmem:[%s5043_s1 + $0x258] sm:$0xf0] }
  0x8d   :  { %1836 = vmatpush.bf16.msra.mxu1 %v2158_v5  ;;  %v3071_v5 = vld [vmem:[%s5043_s1 + $0x4] sm:$0xf]  ;;  %v2475_v1 = vld [vmem:[%s5043_s1 + $0x358] sm:$0xf0]  ;;  %v3193_v2 = vld [vmem:[%s5043_s1 + $0x3d4] sm:$0xf] }
  0x8e   :  { %1849 = vmatpush.bf16.msra.mxu2 %v2222_v6  ;;  %v2051_v6 = vld [vmem:[%s5043_s1 + $0x8] sm:$0xf0]  ;;  %v2539_v3 = vld [vmem:[%s5043_s1 + $0x3d8] sm:$0xf0]  ;;  %v3141_v15 = vld [vmem:[%s5043_s1 + $0x234] sm:$0xf] }
  0x8f   :  { %1862 = vmatpush.bf16.msra.mxu3 %v2286_v10  ;;  %v2115_v10 = vld [vmem:[%s5043_s1 + $0x88] sm:$0xf0]  ;;  %v2054_v20 = vor.u32 %v3071_v5, %v2051_v6  ;;  %v2414_v5 = vor.u32 %v3161_v61, %v2411_v63  ;;  %v3143_v6 = vld [vmem:[%s5043_s1 + $0x244] sm:$0xf]  ;;  %v2379_v61 = vld [vmem:[%s5043_s1 + $0x298] sm:$0xf0] }
  0x90   :  { %1824 = vmatpush.bf16.msra.mxu0 %v2086_v16  ;;  %v3149_v16 = vld [vmem:[%s5043_s1 + $0x274] sm:$0xf]  ;;  %v2118_v25 = vor.u32 %v3087_v9, %v2115_v10  ;;  %v2467_v9 = vld [vmem:[%s5043_s1 + $0x348] sm:$0xf0]  ;;  %v3191_v10 = vld [vmem:[%s5043_s1 + $0x3c4] sm:$0xf] }
  0x91   :  { %1837 = vmatpush.bf16.msra.mxu1 %v2150_v17  ;;  %v2363_v17 = vld [vmem:[%s5043_s1 + $0x278] sm:$0xf0] }
  0x92   :  { %1850 = vmatpush.bf16.msra.mxu2 %v2214_v19  ;;  %v3165_v19 = vld [vmem:[%s5043_s1 + $0x2f4] sm:$0xf]  ;;  %v2443_v63 = vld [vmem:[%s5043_s1 + $0x318] sm:$0xf0] }
  0x93   :  { %1863 = vmatpush.bf16.msra.mxu3 %v2278_v24  ;;  %v2491_v24 = vld [vmem:[%s5043_s1 + $0x378] sm:$0xf0] }
  0x94   :  { %1825 = vmatpush.bf16.msra.mxu0 %v2078_v32  ;;  %v2366_v32 = vor.u32 %v3149_v16, %v2363_v17  ;;  %v2331_v16 = vld [vmem:[%s5043_s1 + $0x238] sm:$0xf0]  ;;  %v3157_v17 = vld [vmem:[%s5043_s1 + $0x2b4] sm:$0xf] }
  0x95   :  { %1838 = vmatpush.bf16.msra.mxu1 %v2142_v33  ;;  %v2430_v33 = vor.u32 %v3165_v19, %v2427_v21  ;;  %v2534_v19 = vor.u32 %v3191_v10, %v2531_v11  ;;  %v3173_v21 = vld [vmem:[%s5043_s1 + $0x334] sm:$0xf]  ;;  %v2499_v10 = vld [vmem:[%s5043_s1 + $0x388] sm:$0xf0] }
  0x96   :  { %1851 = vmatpush.bf16.msra.mxu2 %v2206_v34  ;;  %v2494_v34 = vor.u32 %v3181_v23, %v2491_v24  ;;  %v2459_v23 = vld [vmem:[%s5043_s1 + $0x338] sm:$0xf0]  ;;  %v3189_v24 = vld [vmem:[%s5043_s1 + $0x3b4] sm:$0xf] }
  0x97   :  { %1864 = vmatpush.bf16.msra.mxu3 %v2270_v39  ;;  %v2558_v39 = vor.u32 %v3197_v27, %v2555_v28  ;;  %v2462_v28 = vor.u32 %v3173_v21, %v2459_v23 }
  0x98   :  { %1826 = vmatpush.bf16.msra.mxu0 %v2070_v56  ;;  %v2358_v56 = vor.u32 %v3147_v35, %v2355_v36  ;;  %v2387_v35 = vld [vmem:[%s5043_s1 + $0x2a8] sm:$0xf0]  ;;  %v3171_v36 = vld [vmem:[%s5043_s1 + $0x324] sm:$0xf] }
  0x99   :  { %1839 = vmatpush.bf16.msra.mxu1 %v2134_v57  ;;  %v2422_v57 = vor.u32 %v3163_v38, %v2419_v43  ;;  %v2451_v38 = vld [vmem:[%s5043_s1 + $0x328] sm:$0xf0] }
  0x9a   :  { %1852 = vmatpush.bf16.msra.mxu2 %v2198_v58  ;;  %v2486_v58 = vor.u32 %v3179_v44, %v2483_v47  ;;  %v2515_v43 = vld [vmem:[%s5043_s1 + $0x3a8] sm:$0xf0] }
  0x9b   :  { %1865 = vmatpush.bf16.msra.mxu3 %v2262_v62  ;;  %v2550_v62 = vor.u32 %v3195_v53, %v2547_v54  ;;  %v2454_v54 = vor.u32 %v3171_v36, %v2451_v38 }
  0x9c   :  { %1827 = vmatpush.bf16.msra.mxu0 %v2062_v4  ;;  %v2350_v4 = vor.u32 %v3145_v59, %v2347_v60 }
  0x9d   :  { %1840 = vmatpush.bf16.msra.mxu1 %v2126_v7  ;;  %v2339_v7 = vld [vmem:[%s5043_s1 + $0x248] sm:$0xf0] }
  0x9e   :  { %1853 = vmatpush.bf16.msra.mxu2 %v2190_v8  ;;  %v3175_v8 = vld [vmem:[%s5043_s1 + $0x344] sm:$0xf] }
  0x9f   :  { %1866 = vmatpush.bf16.msra.mxu3 %v2254_v12  ;;  %v2342_v12 = vor.u32 %v3143_v6, %v2339_v7  ;;  %v2470_v14 = vor.u32 %v3175_v8, %v2467_v9  ;;  %v3151_v7 = vld [vmem:[%s5043_s1 + $0x284] sm:$0xf]  ;;  %v2435_v8 = vld [vmem:[%s5043_s1 + $0x308] sm:$0xf0] }
  0xa0   :  { %1828 = vmatpush.bf16.msra.mxu0 %v2054_v20  ;;  %v2395_v20 = vld [vmem:[%s5043_s1 + $0x2b8] sm:$0xf0]  ;;  %v3183_v9 = vld [vmem:[%s5043_s1 + $0x384] sm:$0xf] }
  0xa1   :  { %1841 = vmatpush.bf16.msra.mxu1 %v2118_v25  ;;  %v2523_v25 = vld [vmem:[%s5043_s1 + $0x3b8] sm:$0xf0]  ;;  %v2398_v27 = vor.u32 %v3157_v17, %v2395_v20  ;;  %v3245_v17 = vld [vmem:[%s5043_s1 + $0x574] sm:$0xf] }
  0xa2   :  { %1854 = vmatpush.bf16.msra.mxu2 %v2182_v26  ;;  %v2334_v26 = vor.u32 %v3141_v15, %v2331_v16  ;;  %v2683_v16 = vld [vmem:[%s5043_s1 + $0x4f8] sm:$0xf0] }
  0xa3   :  { %1867 = vmatpush.bf16.msra.mxu3 %v2246_v29  ;;  %1829 = vmatmul.bf16.vlgmr.msra.gmra.mxu0 %v3683_v30  ;;  %v2542_v30 = vor.u32 %v3193_v2, %v2539_v3  ;;  %v3139_v29 = vld [vmem:[%s5043_s1 + $0x224] sm:$0xf]  ;;  %v4555_v47 = vpop.f32.mrf.mxu0 }
  0xa4   :  { %1873 = vmatpush.bf16.msrb.mxu0 %v2366_v32  ;;  %1842 = vmatmul.bf16.vlgmr.msra.gmra.mxu1 %v3685_v31  ;;  %v2403_v31 = vld [vmem:[%s5043_s1 + $0x2c8] sm:$0xf0]  ;;  %v4566_v59 = vpop.f32.mrf.mxu1 }
  0xa5   :  { %1886 = vmatpush.bf16.msrb.mxu1 %v2430_v33  ;;  %1855 = vmatmul.bf16.vlgmr.msra.gmra.mxu2 %v3663_v18  ;;  %v2478_v18 = vor.u32 %v3177_v0, %v2475_v1  ;;  %v2323_v32 = vld [vmem:[%s5043_s1 + $0x228] sm:$0xf0]  ;;  %v3155_v33 = vld [vmem:[%s5043_s1 + $0x2a4] sm:$0xf]  ;;  %v3185_v0 = vld [vmem:[%s5043_s1 + $0x394] sm:$0xf] }
  0xa6   :  { %1899 = vmatpush.bf16.msrb.mxu2 %v2494_v34  ;;  %1868 = vmatmul.bf16.vlgmr.msra.gmra.mxu3 %v3671_v22  ;;  %v3159_v22 = vld [vmem:[%s5043_s1 + $0x2c4] sm:$0xf]  ;;  %v2526_v34 = vor.u32 %v3189_v24, %v2523_v25  ;;  %v2326_v44 = vor.u32 %v3139_v29, %v2323_v32  ;;  %v2390_v53 = vor.u32 %v3155_v33, %v2387_v35  ;;  %v2507_v1 = vld [vmem:[%s5043_s1 + $0x398] sm:$0xf0]  ;;  %v3261_v24 = vld [vmem:[%s5043_s1 + $0x5f4] sm:$0xf] }
  0xa7   :  { %1912 = vmatpush.bf16.msrb.mxu3 %v2558_v39  ;;  %v2406_v13 = vor.u32 %v3159_v22, %v2403_v31  ;;  %v3187_v39 = vld [vmem:[%s5043_s1 + $0x3a4] sm:$0xf]  ;;  %v2371_v22 = vld [vmem:[%s5043_s1 + $0x288] sm:$0xf0]  ;;  %v2510_v31 = vor.u32 %v3185_v0, %v2507_v1  ;;  %v2811_v25 = vld [vmem:[%s5043_s1 + $0x5f8] sm:$0xf0] }
  0xa8   :  { %1874 = vmatpush.bf16.msrb.mxu0 %v2358_v56  ;;  %v3137_v56 = vld [vmem:[%s5043_s1 + $0x214] sm:$0xf]  ;;  %v2518_v60 = vor.u32 %v3187_v39, %v2515_v43  ;;  %v4583_v2 = vpop.f32.mrf.mxu2  ;;  %v2374_v21 = vor.u32 %v3151_v7, %v2371_v22  ;;  %v3211_v33 = vld [vmem:[%s5043_s1 + $0x464] sm:$0xf]  ;;  %v2814_v38 = vor.u32 %v3261_v24, %v2811_v25  ;;  %v2675_v39 = vld [vmem:[%s5043_s1 + $0x4e8] sm:$0xf0] }
  0xa9   :  { %1887 = vmatpush.bf16.msrb.mxu1 %v2422_v57  ;;  %v2315_v57 = vld [vmem:[%s5043_s1 + $0x218] sm:$0xf0]  ;;  %v3227_v35 = vld [vmem:[%s5043_s1 + $0x4e4] sm:$0xf]  ;;  %v3237_v24 = vld [vmem:[%s5043_s1 + $0x534] sm:$0xf] }
  0xaa   :  { %1900 = vmatpush.bf16.msrb.mxu2 %v2486_v58  ;;  %v3153_v58 = vld [vmem:[%s5043_s1 + $0x294] sm:$0xf]  ;;  %v2318_v3 = vor.u32 %v3137_v56, %v2315_v57  ;;  %v3243_v43 = vld [vmem:[%s5043_s1 + $0x564] sm:$0xf]  ;;  %v2667_v1 = vld [vmem:[%s5043_s1 + $0x4d8] sm:$0xf0] }
  0xab   :  { %1913 = vmatpush.bf16.msrb.mxu3 %v2550_v62  ;;  %v3169_v62 = vld [vmem:[%s5043_s1 + $0x314] sm:$0xf]  ;;  %v4609_v11 = vpop.f32.mrf.mxu3  ;;  %v1624_v20 = vpop.f32.mrf.mxu0  ;;  %v3223_v22 = vld [vmem:[%s5043_s1 + $0x4c4] sm:$0xf]  ;;  %v2715_v25 = vld [vmem:[%s5043_s1 + $0x538] sm:$0xf0] }
  0xac   :  { %1875 = vmatpush.bf16.msrb.mxu0 %v2350_v4  ;;  %v3135_v4 = vld [vmem:[%s5043_s1 + $0x204] sm:$0xf]  ;;  %v2446_v6 = vor.u32 %v3169_v62, %v2443_v63  ;;  %v2603_v62 = vld [vmem:[%s5043_s1 + $0x458] sm:$0xf0]  ;;  %v3225_v63 = vld [vmem:[%s5043_s1 + $0x4d4] sm:$0xf] }
  0xad   :  { %1888 = vmatpush.bf16.msrb.mxu1 %v2414_v5  ;;  %v2307_v5 = vld [vmem:[%s5043_s1 + $0x208] sm:$0xf0] }
  0xae   :  { %1901 = vmatpush.bf16.msrb.mxu2 %v2478_v18  ;;  %v2382_v18 = vor.u32 %v3153_v58, %v2379_v61  ;;  %v2310_v15 = vor.u32 %v3135_v4, %v2307_v5  ;;  %v2678_v58 = vor.u32 %v3227_v35, %v2675_v39  ;;  %v3209_v61 = vld [vmem:[%s5043_s1 + $0x454] sm:$0xf]  ;;  %v2731_v4 = vld [vmem:[%s5043_s1 + $0x558] sm:$0xf0]  ;;  %v3219_v35 = vld [vmem:[%s5043_s1 + $0x4a4] sm:$0xf] }
  0xaf   :  { %1914 = vmatpush.bf16.msrb.mxu3 %v2542_v30  ;;  %v3167_v30 = vld [vmem:[%s5043_s1 + $0x304] sm:$0xf]  ;;  %v2795_v5 = vld [vmem:[%s5043_s1 + $0x5d8] sm:$0xf0]  ;;  %v2643_v39 = vld [vmem:[%s5043_s1 + $0x4a8] sm:$0xf0] }
  0xb0   :  { %1876 = vmatpush.bf16.msrb.mxu0 %v2342_v12  ;;  %v3213_v12 = vld [vmem:[%s5043_s1 + $0x474] sm:$0xf]  ;;  %v2438_v23 = vor.u32 %v3167_v30, %v2435_v8  ;;  %v1650_v36 = vpop.f32.mrf.mxu2  ;;  %v2723_v8 = vld [vmem:[%s5043_s1 + $0x548] sm:$0xf0] }
  0xb1   :  { %1889 = vmatpush.bf16.msrb.mxu1 %v2406_v13  ;;  %v2619_v13 = vld [vmem:[%s5043_s1 + $0x478] sm:$0xf0] }
  0xb2   :  { %1902 = vmatpush.bf16.msrb.mxu2 %v2470_v14  ;;  %v3229_v14 = vld [vmem:[%s5043_s1 + $0x4f4] sm:$0xf] }
  0xb3   :  { %1915 = vmatpush.bf16.msrb.mxu3 %v2534_v19  ;;  %v2747_v19 = vld [vmem:[%s5043_s1 + $0x578] sm:$0xf0]  ;;  %v2686_v29 = vor.u32 %v3229_v14, %v2683_v16  ;;  %v1663_v57 = vpop.f32.mrf.mxu3  ;;  %v3205_v16 = vld [vmem:[%s5043_s1 + $0x434] sm:$0xf] }
  0xb4   :  { %1877 = vmatpush.bf16.msrb.mxu0 %v2334_v26  ;;  %v1637_v26 = vpop.f32.mrf.mxu1  ;;  %v2750_v32 = vor.u32 %v3245_v17, %v2747_v19  ;;  %v2587_v17 = vld [vmem:[%s5043_s1 + $0x438] sm:$0xf0]  ;;  %v3221_v19 = vld [vmem:[%s5043_s1 + $0x4b4] sm:$0xf]  ;;  %v4770_v57 = vld [vmem:[%s5044_s2] sm:$0x3] }
  0xb5   :  { %1890 = vmatpush.bf16.msrb.mxu1 %v2398_v27  ;;  %v2502_v27 = vor.u32 %v3183_v9, %v2499_v10  ;;  %v3255_v9 = vld [vmem:[%s5043_s1 + $0x5c4] sm:$0xf]  ;;  %v2787_v10 = vld [vmem:[%s5043_s1 + $0x5c8] sm:$0xf0]  ;;  %v3253_v26 = vld [vmem:[%s5043_s1 + $0x5b4] sm:$0xf] }
  0xb6   :  { %1903 = vmatpush.bf16.msrb.mxu2 %v2462_v28  ;;  %v2622_v28 = vor.u32 %v3213_v12, %v2619_v13 }
  0xb7   :  { %1916 = vmatpush.bf16.msrb.mxu3 %v2526_v34  ;;  %v2611_v34 = vld [vmem:[%s5043_s1 + $0x468] sm:$0xf0] }
  0xb8   :  { %1878 = vmatpush.bf16.msrb.mxu0 %v2326_v44  ;;  %v2739_v44 = vld [vmem:[%s5043_s1 + $0x568] sm:$0xf0]  ;;  %v2614_v56 = vor.u32 %v3211_v33, %v2611_v34  ;;  %v3203_v33 = vld [vmem:[%s5043_s1 + $0x424] sm:$0xf] }
  0xb9   :  { %1891 = vmatpush.bf16.msrb.mxu1 %v2390_v53  ;;  %v3259_v53 = vld [vmem:[%s5043_s1 + $0x5e4] sm:$0xf]  ;;  %v2579_v34 = vld [vmem:[%s5043_s1 + $0x428] sm:$0xf0] }
  0xba   :  { %1904 = vmatpush.bf16.msrb.mxu2 %v2454_v54  ;;  %v2803_v54 = vld [vmem:[%s5043_s1 + $0x5e8] sm:$0xf0] }
  0xbb   :  { %1917 = vmatpush.bf16.msrb.mxu3 %v2518_v60  ;;  %v2742_v60 = vor.u32 %v3243_v43, %v2739_v44  ;;  %v2806_v0 = vor.u32 %v3259_v53, %v2803_v54  ;;  %v3235_v43 = vld [vmem:[%s5043_s1 + $0x524] sm:$0xf]  ;;  %v2707_v44 = vld [vmem:[%s5043_s1 + $0x528] sm:$0xf0] }
  0xbc   :  { %1879 = vmatpush.bf16.msrb.mxu0 %v2318_v3  ;;  %v3241_v3 = vld [vmem:[%s5043_s1 + $0x554] sm:$0xf]  ;;  %v3251_v54 = vld [vmem:[%s5043_s1 + $0x5a4] sm:$0xf] }
  0xbd   :  { %1892 = vmatpush.bf16.msrb.mxu1 %v2382_v18  ;;  %v2606_v18 = vor.u32 %v3209_v61, %v2603_v62  ;;  %v2734_v7 = vor.u32 %v3241_v3, %v2731_v4  ;;  %v2646_v61 = vor.u32 %v3219_v35, %v2643_v39  ;;  %v2710_v62 = vor.u32 %v3235_v43, %v2707_v44 }
  0xbe   :  { %1905 = vmatpush.bf16.msrb.mxu2 %v2446_v6  ;;  %v2670_v6 = vor.u32 %v3225_v63, %v2667_v1  ;;  %v3201_v63 = vld [vmem:[%s5043_s1 + $0x414] sm:$0xf] }
  0xbf   :  { %1918 = vmatpush.bf16.msrb.mxu3 %v2510_v31  ;;  %v3239_v31 = vld [vmem:[%s5043_s1 + $0x544] sm:$0xf]  ;;  %v3217_v1 = vld [vmem:[%s5043_s1 + $0x494] sm:$0xf] }
  0xc0   :  { %1880 = vmatpush.bf16.msrb.mxu0 %v2310_v15  ;;  %v4711_v13 = vpop.f32.mrf.mxu0  ;;  %v2726_v15 = vor.u32 %v3239_v31, %v2723_v8  ;;  %v3215_v8 = vld [vmem:[%s5043_s1 + $0x484] sm:$0xf] }
  0xc1   :  { %1893 = vmatpush.bf16.msrb.mxu1 %v2374_v21  ;;  %v4722_v20 = vpop.f32.mrf.mxu1  ;;  %v2790_v21 = vor.u32 %v3255_v9, %v2787_v10  ;;  %v2627_v9 = vld [vmem:[%s5043_s1 + $0x488] sm:$0xf0]  ;;  %v3231_v10 = vld [vmem:[%s5043_s1 + $0x504] sm:$0xf] }
  0xc2   :  { %1906 = vmatpush.bf16.msrb.mxu2 %v2438_v23  ;;  %v2651_v23 = vld [vmem:[%s5043_s1 + $0x4b8] sm:$0xf0] }
  0xc3   :  { %1919 = vmatpush.bf16.msrb.mxu3 %v2502_v27  ;;  %1881 = vmatmul.bf16.vlgmr.msrb.gmra.mxu0 %v3833_v49  ;;  %v3207_v49 = vld [vmem:[%s5043_s1 + $0x444] sm:$0xf]  ;;  %v2779_v27 = vld [vmem:[%s5043_s1 + $0x5b8] sm:$0xf0] }
  0xc4   :  { %1925 = vmatpush.bf16.msra.mxu0 %v2622_v28  ;;  %1894 = vmatmul.bf16.vlgmr.msrb.gmra.mxu1 %v3837_v52  ;;  %v2659_v52 = vld [vmem:[%s5043_s1 + $0x4c8] sm:$0xf0]  ;;  %v2590_v28 = vor.u32 %v3205_v16, %v2587_v17  ;;  %v3247_v16 = vld [vmem:[%s5043_s1 + $0x584] sm:$0xf] }
  0xc5   :  { %1938 = vmatpush.bf16.msra.mxu1 %v2686_v29  ;;  %1907 = vmatmul.bf16.vlgmr.msrb.gmra.mxu2 %v3825_v46  ;;  %v3257_v46 = vld [vmem:[%s5043_s1 + $0x5d4] sm:$0xf]  ;;  %v2662_v14 = vor.u32 %v3223_v22, %v2659_v52  ;;  %v2654_v29 = vor.u32 %v3221_v19, %v2651_v23  ;;  %v3199_v22 = vld [vmem:[%s5043_s1 + $0x404] sm:$0xf]  ;;  %v2755_v17 = vld [vmem:[%s5043_s1 + $0x588] sm:$0xf0] }
  0xc6   :  { %1951 = vmatpush.bf16.msra.mxu2 %v2750_v32  ;;  %1920 = vmatmul.bf16.vlgmr.msrb.gmra.mxu3 %v3835_v50  ;;  %v2595_v50 = vld [vmem:[%s5043_s1 + $0x448] sm:$0xf0]  ;;  %v2798_v30 = vor.u32 %v3257_v46, %v2795_v5  ;;  %v2718_v32 = vor.u32 %v3237_v24, %v2715_v25  ;;  %v2635_v46 = vld [vmem:[%s5043_s1 + $0x498] sm:$0xf0]  ;;  %v3233_v5 = vld [vmem:[%s5043_s1 + $0x514] sm:$0xf]  ;;  %v2758_v35 = vor.u32 %v3247_v16, %v2755_v17 }
  0xc7   :  { %1964 = vmatpush.bf16.msra.mxu3 %v2814_v38  ;;  %v2598_v12 = vor.u32 %v3207_v49, %v2595_v50  ;;  %v2782_v38 = vor.u32 %v3253_v26, %v2779_v27  ;;  %v329_v49 = vperm.slane %v4770_v57, 0  ;;  %v2638_v52 = vor.u32 %v3217_v1, %v2635_v46  ;;  %v2875_v23 = vld [vmem:[%s5043_s1 + $0x678] sm:$0xf0]  ;;  %v3293_v24 = vld [vmem:[%s5043_s1 + $0x6f4] sm:$0xf] }
  0xc8   :  { %1926 = vmatpush.bf16.msra.mxu0 %v2614_v56  ;;  %v4748_v36 = vpop.f32.mrf.mxu2  ;;  %v2771_v56 = vld [vmem:[%s5043_s1 + $0x5a8] sm:$0xf0]  ;;  %v2939_v26 = vld [vmem:[%s5043_s1 + $0x6f8] sm:$0xf0]  ;;  %v3309_v27 = vld [vmem:[%s5043_s1 + $0x774] sm:$0xf] }
  0xc9   :  { %1939 = vmatpush.bf16.msra.mxu1 %v2678_v58  ;;  %v4759_v53 = vpop.f32.mrf.mxu3  ;;  %v2582_v58 = vor.u32 %v3203_v33, %v2579_v34  ;;  %v1689_v3 = vpop.f32.mrf.mxu1  ;;  %v2774_v4 = vor.u32 %v3251_v54, %v2771_v56  ;;  %v3325_v33 = vld [vmem:[%s5043_s1 + $0x7f4] sm:$0xf]  ;;  %v3067_v34 = vld [vmem:[%s5043_s1 + $0x7f8] sm:$0xf0]  ;;  %v1623_v39 = vadd.f32 %v4555_v47, %v329_v49  ;;  %v2942_v43 = vor.u32 %v3293_v24, %v2939_v26  ;;  %v3275_v54 = vld [vmem:[%s5043_s1 + $0x664] sm:$0xf] }
  0xca   :  { %1952 = vmatpush.bf16.msra.mxu2 %v2742_v60  ;;  %v1676_v60 = vpop.f32.mrf.mxu0  ;;  %v2867_v56 = vld [vmem:[%s5043_s1 + $0x668] sm:$0xf0]  ;;  %v3305_v49 = vld [vmem:[%s5043_s1 + $0x754] sm:$0xf]  ;;  %v2843_v26 = vld [vmem:[%s5043_s1 + $0x638] sm:$0xf0] }
  0xcb   :  { %1965 = vmatpush.bf16.msra.mxu3 %v2806_v0  ;;  %v2571_v0 = vld [vmem:[%s5043_s1 + $0x418] sm:$0xf0]  ;;  %v3070_v60 = vor.u32 %v3325_v33, %v3067_v34  ;;  %v2931_v47 = vld [vmem:[%s5043_s1 + $0x6e8] sm:$0xf0]  ;;  %v2870_v1 = vor.u32 %v3275_v54, %v2867_v56  ;;  %v1636_v3 = vadd.f32 %v4566_v59, %v1623_v39  ;;  %v3317_v33 = vld [vmem:[%s5043_s1 + $0x7b4] sm:$0xf] }
  0xcc   :  { %1927 = vmatpush.bf16.msra.mxu0 %v2606_v18  ;;  %v2699_v18 = vld [vmem:[%s5043_s1 + $0x518] sm:$0xf0]  ;;  %v2574_v50 = vor.u32 %v3201_v63, %v2571_v0  ;;  %v3323_v63 = vld [vmem:[%s5043_s1 + $0x7e4] sm:$0xf]  ;;  %v3059_v0 = vld [vmem:[%s5043_s1 + $0x7e8] sm:$0xf0] }
  0xcd   :  { %1940 = vmatpush.bf16.msra.mxu1 %v2670_v6  ;;  %v3249_v6 = vld [vmem:[%s5043_s1 + $0x594] sm:$0xf]  ;;  %v2702_v31 = vor.u32 %v3233_v5, %v2699_v18  ;;  %v2859_v18 = vld [vmem:[%s5043_s1 + $0x658] sm:$0xf0]  ;;  %v3062_v59 = vor.u32 %v3323_v63, %v3059_v0  ;;  %v3043_v16 = vld [vmem:[%s5043_s1 + $0x7c8] sm:$0xf0] }
  0xce   :  { %1953 = vmatpush.bf16.msra.mxu2 %v2734_v7  ;;  %v2763_v7 = vld [vmem:[%s5043_s1 + $0x598] sm:$0xf0]  ;;  %v3273_v5 = vld [vmem:[%s5043_s1 + $0x654] sm:$0xf]  ;;  %v2835_v54 = vld [vmem:[%s5043_s1 + $0x628] sm:$0xf0] }
  0xcf   :  { %1966 = vmatpush.bf16.msra.mxu3 %v2798_v30  ;;  %v2563_v30 = vld [vmem:[%s5043_s1 + $0x408] sm:$0xf0]  ;;  %v3035_v34 = vld [vmem:[%s5043_s1 + $0x7b8] sm:$0xf0]  ;;  %v3283_v56 = vld [vmem:[%s5043_s1 + $0x6a4] sm:$0xf] }
  0xd0   :  { %1928 = vmatpush.bf16.msra.mxu0 %v2598_v12  ;;  %v1702_v12 = vpop.f32.mrf.mxu2  ;;  %v2566_v25 = vor.u32 %v3199_v22, %v2563_v30  ;;  %v3051_v22 = vld [vmem:[%s5043_s1 + $0x7d8] sm:$0xf0]  ;;  %v2862_v30 = vor.u32 %v3273_v5, %v2859_v18  ;;  %v3315_v63 = vld [vmem:[%s5043_s1 + $0x7a4] sm:$0xf]  ;;  %v3027_v0 = vld [vmem:[%s5043_s1 + $0x7a8] sm:$0xf0] }
  0xd1   :  { %1941 = vmatpush.bf16.msra.mxu1 %v2662_v14  ;;  %v2766_v14 = vor.u32 %v3249_v6, %v2763_v7  ;;  %v1715_v19 = vpop.f32.mrf.mxu3  ;;  %v3289_v6 = vld [vmem:[%s5043_s1 + $0x6d4] sm:$0xf]  ;;  %v2923_v7 = vld [vmem:[%s5043_s1 + $0x6d8] sm:$0xf0]  ;;  %v2979_v12 = vld [vmem:[%s5043_s1 + $0x748] sm:$0xf0] }
  0xd2   :  { %1954 = vmatpush.bf16.msra.mxu2 %v2726_v15  ;;  %v2691_v15 = vld [vmem:[%s5043_s1 + $0x508] sm:$0xf0] }
  0xd3   :  { %1967 = vmatpush.bf16.msra.mxu3 %v2790_v21  ;;  %v3277_v21 = vld [vmem:[%s5043_s1 + $0x674] sm:$0xf] }
  0xd4   :  { %1929 = vmatpush.bf16.msra.mxu0 %v2590_v28  ;;  %v3003_v28 = vld [vmem:[%s5043_s1 + $0x778] sm:$0xf0] }
  0xd5   :  { %1942 = vmatpush.bf16.msra.mxu1 %v2654_v29  ;;  %v2630_v29 = vor.u32 %v3215_v8, %v2627_v9  ;;  %v3006_v44 = vor.u32 %v3309_v27, %v3003_v28  ;;  %v2851_v8 = vld [vmem:[%s5043_s1 + $0x648] sm:$0xf0]  ;;  %v3285_v27 = vld [vmem:[%s5043_s1 + $0x6b4] sm:$0xf] }
  0xd6   :  { %1955 = vmatpush.bf16.msra.mxu2 %v2718_v32  ;;  %v2694_v32 = vor.u32 %v3231_v10, %v2691_v15  ;;  %v3303_v10 = vld [vmem:[%s5043_s1 + $0x744] sm:$0xf] }
  0xd7   :  { %1968 = vmatpush.bf16.msra.mxu3 %v2782_v38  ;;  %v2878_v38 = vor.u32 %v3277_v21, %v2875_v23  ;;  %v3319_v15 = vld [vmem:[%s5043_s1 + $0x7c4] sm:$0xf]  ;;  %v2982_v24 = vor.u32 %v3303_v10, %v2979_v12  ;;  %v2947_v12 = vld [vmem:[%s5043_s1 + $0x708] sm:$0xf0] }
  0xd8   :  { %1930 = vmatpush.bf16.msra.mxu0 %v2582_v58  ;;  %v3291_v58 = vld [vmem:[%s5043_s1 + $0x6e4] sm:$0xf]  ;;  %v3046_v28 = vor.u32 %v3319_v15, %v3043_v16 }
  0xd9   :  { %1943 = vmatpush.bf16.msra.mxu1 %v2646_v61  ;;  %v3307_v61 = vld [vmem:[%s5043_s1 + $0x764] sm:$0xf] }
  0xda   :  { %1956 = vmatpush.bf16.msra.mxu2 %v2710_v62  ;;  %v2995_v62 = vld [vmem:[%s5043_s1 + $0x768] sm:$0xf0]  ;;  %v3295_v10 = vld [vmem:[%s5043_s1 + $0x704] sm:$0xf] }
  0xdb   :  { %1969 = vmatpush.bf16.msra.mxu3 %v2774_v4  ;;  %v2934_v4 = vor.u32 %v3291_v58, %v2931_v47  ;;  %v2998_v46 = vor.u32 %v3307_v61, %v2995_v62  ;;  %v3038_v58 = vor.u32 %v3317_v33, %v3035_v34  ;;  %v3299_v47 = vld [vmem:[%s5043_s1 + $0x724] sm:$0xf]  ;;  %v2963_v61 = vld [vmem:[%s5043_s1 + $0x728] sm:$0xf0] }
  0xdc   :  { %1931 = vmatpush.bf16.msra.mxu0 %v2574_v50  ;;  %v2987_v50 = vld [vmem:[%s5043_s1 + $0x758] sm:$0xf0]  ;;  %v2966_v18 = vor.u32 %v3299_v47, %v2963_v61  ;;  %v3311_v16 = vld [vmem:[%s5043_s1 + $0x784] sm:$0xf] }
  0xdd   :  { %1944 = vmatpush.bf16.msra.mxu1 %v2638_v52  ;;  %v1649_v52 = vadd.f32 %v4583_v2, %v1636_v3  ;;  %v2915_v2 = vld [vmem:[%s5043_s1 + $0x6c8] sm:$0xf0] }
  0xde   :  { %1957 = vmatpush.bf16.msra.mxu2 %v2702_v31  ;;  %v2926_v31 = vor.u32 %v3289_v6, %v2923_v7  ;;  %v3265_v6 = vld [vmem:[%s5043_s1 + $0x614] sm:$0xf] }
  0xdf   :  { %1970 = vmatpush.bf16.msra.mxu3 %v2766_v14  ;;  %v1662_v21 = vadd.f32 %v4609_v11, %v1649_v52  ;;  %v2907_v11 = vld [vmem:[%s5043_s1 + $0x6b8] sm:$0xf0]  ;;  %v3281_v7 = vld [vmem:[%s5043_s1 + $0x694] sm:$0xf] }
  0xe0   :  { %1932 = vmatpush.bf16.msra.mxu0 %v2566_v25  ;;  %v4918_v14 = vpop.f32.mrf.mxu0  ;;  %v3269_v25 = vld [vmem:[%s5043_s1 + $0x634] sm:$0xf]  ;;  %v2910_v39 = vor.u32 %v3285_v27, %v2907_v11 }
  0xe1   :  { %1945 = vmatpush.bf16.msra.mxu1 %v2630_v29  ;;  %v4926_v19 = vpop.f32.mrf.mxu1  ;;  %v3301_v29 = vld [vmem:[%s5043_s1 + $0x734] sm:$0xf] }
  0xe2   :  { %1958 = vmatpush.bf16.msra.mxu2 %v2694_v32  ;;  %v2971_v32 = vld [vmem:[%s5043_s1 + $0x738] sm:$0xf0] }
  0xe3   :  { %1971 = vmatpush.bf16.msra.mxu3 %v2758_v35  ;;  %1933 = vmatmul.bf16.vlgmr.msra.gmra.mxu0 %v4026_v37  ;;  %v3321_v37 = vld [vmem:[%s5043_s1 + $0x7d4] sm:$0xf]  ;;  %v2846_v35 = vor.u32 %v3269_v25, %v2843_v26  ;;  %v2950_v26 = vor.u32 %v3295_v10, %v2947_v12 }
  0xe4   :  { %1977 = vmatpush.bf16.msrb.mxu0 %v2878_v38  ;;  %1946 = vmatmul.bf16.vlgmr.msra.gmra.mxu1 %v4039_v42  ;;  %v3271_v42 = vld [vmem:[%s5043_s1 + $0x644] sm:$0xf]  ;;  %v3054_v9 = vor.u32 %v3321_v37, %v3051_v22  ;;  %v1675_v38 = vadd.f32 %v4711_v13, %v1662_v21  ;;  %v2899_v13 = vld [vmem:[%s5043_s1 + $0x6a8] sm:$0xf0]  ;;  %v2955_v37 = vld [vmem:[%s5043_s1 + $0x718] sm:$0xf0] }
  0xe5   :  { %1990 = vmatpush.bf16.msrb.mxu1 %v2942_v43  ;;  %1959 = vmatmul.bf16.vlgmr.msra.gmra.mxu2 %v4037_v41  ;;  %v2990_v41 = vor.u32 %v3305_v49, %v2987_v50  ;;  %v2854_v17 = vor.u32 %v3271_v42, %v2851_v8  ;;  %v2974_v43 = vor.u32 %v3301_v29, %v2971_v32  ;;  %v3297_v50 = vld [vmem:[%s5043_s1 + $0x714] sm:$0xf]  ;;  %v3263_v8 = vld [vmem:[%s5043_s1 + $0x604] sm:$0xf] }
  0xe6   :  { %2003 = vmatpush.bf16.msrb.mxu2 %v3006_v44  ;;  %1972 = vmatmul.bf16.vlgmr.msra.gmra.mxu3 %v4047_v45  ;;  %v3287_v45 = vld [vmem:[%s5043_s1 + $0x6c4] sm:$0xf]  ;;  %v2902_v5 = vor.u32 %v3283_v56, %v2899_v13  ;;  %v3030_v49 = vor.u32 %v3315_v63, %v3027_v0  ;;  %v3313_v22 = vld [vmem:[%s5043_s1 + $0x794] sm:$0xf]  ;;  %v2958_v42 = vor.u32 %v3297_v50, %v2955_v37 }
  0xe7   :  { %2016 = vmatpush.bf16.msrb.mxu3 %v3070_v60  ;;  %v2918_v23 = vor.u32 %v3287_v45, %v2915_v2  ;;  %v3267_v44 = vld [vmem:[%s5043_s1 + $0x624] sm:$0xf]  ;;  %v2819_v45 = vld [vmem:[%s5043_s1 + $0x608] sm:$0xf0] }
  0xe8   :  { %1978 = vmatpush.bf16.msrb.mxu0 %v2870_v1  ;;  %v4963_v60 = vpop.f32.mrf.mxu2  ;;  %v1728_v1 = vpop.f32.mrf.mxu0  ;;  %v2838_v3 = vor.u32 %v3267_v44, %v2835_v54 }
  0xe9   :  { %1991 = vmatpush.bf16.msrb.mxu1 %v2934_v4  ;;  %v1765_v62 = vpop.f32.mrf.mxu3  ;;  %v1741_v4 = vpop.f32.mrf.mxu1 }
  0xea   :  { %2004 = vmatpush.bf16.msrb.mxu2 %v2998_v46  ;;  %v1688_v46 = vadd.f32 %v4722_v20, %v1675_v38  ;;  %v2891_v20 = vld [vmem:[%s5043_s1 + $0x698] sm:$0xf0] }
  0xeb   :  { %2017 = vmatpush.bf16.msrb.mxu3 %v3062_v59  ;;  %v2827_v59 = vld [vmem:[%s5043_s1 + $0x618] sm:$0xf0] }
  0xec   :  { %1979 = vmatpush.bf16.msrb.mxu0 %v2862_v30  ;;  %v3019_v30 = vld [vmem:[%s5043_s1 + $0x798] sm:$0xf0]  ;;  %v2830_v52 = vor.u32 %v3265_v6, %v2827_v59 }
  0xed   :  { %1992 = vmatpush.bf16.msrb.mxu1 %v2926_v31  ;;  %v1701_v31 = vadd.f32 %v4748_v36, %v1688_v46  ;;  %v3022_v2 = vor.u32 %v3313_v22, %v3019_v30  ;;  %v2883_v36 = vld [vmem:[%s5043_s1 + $0x688] sm:$0xf0] }
  0xee   :  { %2005 = vmatpush.bf16.msrb.mxu2 %v2990_v41  ;;  %v2894_v41 = vor.u32 %v3281_v7, %v2891_v20 }
  0xef   :  { %2018 = vmatpush.bf16.msrb.mxu3 %v3054_v9  ;;  %v3279_v9 = vld [vmem:[%s5043_s1 + $0x684] sm:$0xf] }
  0xf0   :  { %1980 = vmatpush.bf16.msrb.mxu0 %v2854_v17  ;;  %v1754_v15 = vpop.f32.mrf.mxu2  ;;  %v3011_v17 = vld [vmem:[%s5043_s1 + $0x788] sm:$0xf0]  ;;  %v2886_v25 = vor.u32 %v3279_v9, %v2883_v36  ;;  %s3354_s1 = smov [#allocation2]  }
  0xf1   :  { %1993 = vmatpush.bf16.msrb.mxu1 %v2918_v23  ;;  %v1767_v21 = vpop.f32.mrf.mxu3  ;;  %v2822_v23 = vor.u32 %v3263_v8, %v2819_v45  ;;  %v3014_v27 = vor.u32 %v3311_v16, %v3011_v17  ;;  %s2036_s30 = sshll.u32 %s3354_s1, 4  ;;  %s2037_s30 = int_to_ptr.vmem [resolvable:$true] %s2036_s30 }
  0xf2   :  { %2006 = vmatpush.bf16.msrb.mxu2 %v2982_v24  ;;  %v1714_v24 = vadd.f32 %v4759_v53, %v1701_v31 }
  0xf3   :  { %2019 = vmatpush.bf16.msrb.mxu3 %v3046_v28 }
  0xf4   :  { %1981 = vmatpush.bf16.msrb.mxu0 %v2846_v35  ;;  %v1727_v28 = vadd.f32 %v4918_v14, %v1714_v24 }
  0xf5   :  { %1994 = vmatpush.bf16.msrb.mxu1 %v2910_v39 }
  0xf6   :  { %2007 = vmatpush.bf16.msrb.mxu2 %v2974_v43  ;;  %v1740_v11 = vadd.f32 %v4926_v19, %v1727_v28 }
  0xf7   :  { %2020 = vmatpush.bf16.msrb.mxu3 %v3038_v58 }
  0xf8   :  { %1982 = vmatpush.bf16.msrb.mxu0 %v2838_v3  ;;  %v1753_v53 = vadd.f32 %v4963_v60, %v1740_v11 }
  0xf9   :  { %1995 = vmatpush.bf16.msrb.mxu1 %v2902_v5 }
  0xfa   :  { %2008 = vmatpush.bf16.msrb.mxu2 %v2966_v18  ;;  %v1766_v29 = vadd.f32 %v1765_v62, %v1753_v53 }
  0xfb   :  { %2021 = vmatpush.bf16.msrb.mxu3 %v3030_v49 }
  0xfc   :  { %1983 = vmatpush.bf16.msrb.mxu0 %v2830_v52 }
  0xfd   :  { %1996 = vmatpush.bf16.msrb.mxu1 %v2894_v41 }
  0xfe   :  { %2009 = vmatpush.bf16.msrb.mxu2 %v2958_v42 }
  0xff   :  { %2022 = vmatpush.bf16.msrb.mxu3 %v3022_v2 }
 0x100   :  { %1984 = vmatpush.bf16.msrb.mxu0 %v2822_v23  ;;  %v1778_v32 = vpop.f32.mrf.mxu0 }
 0x101   :  { %1997 = vmatpush.bf16.msrb.mxu1 %v2886_v25  ;;  %v1791_v33 = vpop.f32.mrf.mxu1  ;;  %v1779_v14 = vadd.f32 %v1778_v32, %v1766_v29 }
 0x102   :  { %2010 = vmatpush.bf16.msrb.mxu2 %v2950_v26 }
 0x103   :  { %2023 = vmatpush.bf16.msrb.mxu3 %v3014_v27  ;;  %1985 = vmatmul.bf16.vlgmr.msrb.gmra.mxu0 %v4236_v40  ;;  %v1792_v34 = vadd.f32 %v1791_v33, %v1779_v14 }
 0x104   :  { %1998 = vmatmul.bf16.vlgmr.msrb.gmra.mxu1 %v4249_v51 }
 0x105   :  { %2011 = vmatmul.bf16.vlgmr.msrb.gmra.mxu2 %v4247_v48  ;;  %v330_v48 = vperm.slane %v4770_v57, 1 }
 0x106   :  { %2024 = vmatmul.bf16.vlgmr.msrb.gmra.mxu3 %v4257_v55 }
 0x108   :  { %v1804_v35 = vpop.f32.mrf.mxu2  ;;  %v1780_v43 = vpop.f32.mrf.mxu0 }
 0x109   :  { %v1805_v38 = vadd.f32 %v1804_v35, %v1792_v34  ;;  %v1817_v39 = vpop.f32.mrf.mxu3  ;;  %v1793_v19 = vpop.f32.mrf.mxu1 }
 0x10b   :  { %v1818_v44 = vadd.f32 %v1817_v39, %v1805_v38 }
 0x10d   :  { %2029 = vst [vmem:[#allocation2] sm:$0xff] %v1818_v44 }
 0x110   :  { %v1806_v40 = vpop.f32.mrf.mxu2 }
 0x111   :  { %v1819_v51 = vpop.f32.mrf.mxu3 }
 0x120   :  { %v1830_v54 = vpop.f32.mrf.mxu0 }
 0x121   :  { %v1831_v56 = vadd.f32 %v1830_v54, %v330_v48  ;;  %v1843_v58 = vpop.f32.mrf.mxu1 }
 0x123   :  { %v1844_v55 = vadd.f32 %v1843_v58, %v1831_v56 }
 0x128   :  { %v1856_v60 = vpop.f32.mrf.mxu2  ;;  %v1832_v62 = vpop.f32.mrf.mxu0 }
 0x129   :  { %v1857_v13 = vadd.f32 %v1856_v60, %v1844_v55  ;;  %v1869_v47 = vpop.f32.mrf.mxu3  ;;  %v1845_v63 = vpop.f32.mrf.mxu1 }
 0x12b   :  { %v1870_v61 = vadd.f32 %v1869_v47, %v1857_v13 }
 0x130   :  { %v1858_v0 = vpop.f32.mrf.mxu2 }
 0x131   :  { %v1871_v1 = vpop.f32.mrf.mxu3 }
 0x140   :  { %v1882_v3 = vpop.f32.mrf.mxu0 }
 0x141   :  { %v1895_v4 = vpop.f32.mrf.mxu1  ;;  %v1883_v20 = vadd.f32 %v1882_v3, %v1870_v61 }
 0x143   :  { %v1896_v30 = vadd.f32 %v1895_v4, %v1883_v20 }
 0x148   :  { %v1908_v46 = vpop.f32.mrf.mxu2  ;;  %v1884_v18 = vpop.f32.mrf.mxu0 }
 0x149   :  { %v1921_v5 = vpop.f32.mrf.mxu3  ;;  %v1897_v6 = vpop.f32.mrf.mxu1  ;;  %v1909_v31 = vadd.f32 %v1908_v46, %v1896_v30 }
 0x14b   :  { %v1922_v8 = vadd.f32 %v1921_v5, %v1909_v31 }
 0x150   :  { %v1910_v59 = vpop.f32.mrf.mxu2 }
 0x151   :  { %v1923_v57 = vpop.f32.mrf.mxu3 }
 0x160   :  { %v1934_v7 = vpop.f32.mrf.mxu0 }
 0x161   :  { %v1947_v49 = vpop.f32.mrf.mxu1  ;;  %v1935_v45 = vadd.f32 %v1934_v7, %v1922_v8 }
 0x163   :  { %v1948_v9 = vadd.f32 %v1947_v49, %v1935_v45 }
 0x168   :  { %v1960_v50 = vpop.f32.mrf.mxu2  ;;  %v1936_v22 = vpop.f32.mrf.mxu0 }
 0x169   :  { %v1973_v37 = vpop.f32.mrf.mxu3  ;;  %v1949_v52 = vpop.f32.mrf.mxu1  ;;  %v1961_v2 = vadd.f32 %v1960_v50, %v1948_v9 }
 0x16b   :  { %v1974_v36 = vadd.f32 %v1973_v37, %v1961_v2 }
 0x170   :  { %v1962_v41 = vpop.f32.mrf.mxu2 }
 0x171   :  { %v1975_v42 = vpop.f32.mrf.mxu3 }
 0x180   :  { %v1986_v10 = vpop.f32.mrf.mxu0 }
 0x181   :  { %v1999_v12 = vpop.f32.mrf.mxu1  ;;  %v1987_v15 = vadd.f32 %v1986_v10, %v1974_v36 }
 0x183   :  { %v2000_v16 = vadd.f32 %v1999_v12, %v1987_v15 }
 0x188   :  { %v2012_v17 = vpop.f32.mrf.mxu2  ;;  %v1988_v24 = vpop.f32.mrf.mxu0 }
 0x189   :  { %v2013_v21 = vadd.f32 %v2012_v17, %v2000_v16  ;;  %v2025_v23 = vpop.f32.mrf.mxu3  ;;  %v2001_v25 = vpop.f32.mrf.mxu1 }
 0x18b   :  { %v2026_v26 = vadd.f32 %v2025_v23, %v2013_v21 }
 0x18d   :  { %2030 = vst [vmem:[#allocation2 + $0x8] sm:$0xff] %v2026_v26 }
 0x18e   :  { %2041 = dma.vmem_to_hbm [thread:$0]  %s2037_s30, 256, %s2039_s6, [#allocation3]  }
 0x190   :  { %v2014_v27 = vpop.f32.mrf.mxu2 }
 0x191   :  { %v2027_v28 = vpop.f32.mrf.mxu3 }
 0x192   :  { %3352 = dma.done.wait [#allocation3], 256  }
 0x193   :  { %3353 = vsyncadd [#allocation3], 4294967040 }
 0x194   :  { %2046 = vsyncpa [#allocation3], 1 }

</bundles_post_ra>
